<compile_context>
chip_gen: v6e
topology: v6e:2x2x1
jax: 0.10.0
libtpu: 0.0.40
codegen_flags: <defaults>
</compile_context>

<pallas_src>
import functools
import math

import jax
import jax.numpy as jnp
from jax.experimental import pallas as pl
from jax.experimental.pallas import tpu as pltpu


def _layernorm(x, gamma, beta, eps=1e-5):
    mu = jnp.mean(x, axis=-1, keepdims=True)
    var = jnp.mean((x - mu) ** 2, axis=-1, keepdims=True)
    return (x - mu) * jax.lax.rsqrt(var + eps) * gamma + beta


def encode_block_kernel(x_ref,
                        wqkv_ref, bqkv_ref, wo_ref, bo_ref,
                        g1_ref, be1_ref,
                        w1_ref, b1_ref, w2_ref, b2_ref,
                        g2_ref, be2_ref,
                        o_ref, *, n_heads):
    xb = x_ref[...]                                   # (rb, S, D) f32, rb whole sequences
    rb, S, D = xb.shape
    hd = D // n_heads
    rows = rb * S
    scale = 1.0 / math.sqrt(hd)
    cdt = jnp.bfloat16                                # MXU input dtype; accumulate/elementwise in f32

    x2d = xb.reshape(rows, D)                         # tall LHS for every row-GEMM

    # --- fused QKV projection: one (rows, D) x (D, 3D) GEMM --------------------
    qkv = jnp.dot(x2d.astype(cdt), wqkv_ref[...],
                  preferred_element_type=jnp.float32) + bqkv_ref[...]   # (rows, 3D) f32
    qkv3 = qkv.reshape(rb, S, 3 * D)

    # --- multi-head attention; W_o folded into per-head accumulation -----------
    # Each head's (rb,S,S) score/prob tensors die at the end of its iteration;
    # only the f32 (rows, D) accumulator persists (no lane-dim concat).
    acc = jnp.zeros((rows, D), jnp.float32)
    for h in range(n_heads):
        q_h = qkv3[:, :, h * hd:(h + 1) * hd].astype(cdt)               # (rb, S, hd)
        k_h = qkv3[:, :, D + h * hd:D + (h + 1) * hd].astype(cdt)
        v_h = qkv3[:, :, 2 * D + h * hd:2 * D + (h + 1) * hd].astype(cdt)

        s = jnp.einsum('bqd,bkd->bqk', q_h, k_h,
                       preferred_element_type=jnp.float32) * scale      # (rb, S, S) f32
        m = jnp.max(s, axis=-1, keepdims=True)
        e = jnp.exp(s - m)
        p = e * pl.reciprocal(jnp.sum(e, axis=-1, keepdims=True), approx=True)
        o_h = jnp.einsum('bqk,bkd->bqd', p.astype(cdt), v_h,
                         preferred_element_type=jnp.float32)            # (rb, S, hd)
        acc = acc + jnp.dot(o_h.reshape(rows, hd).astype(cdt),
                            wo_ref[h * hd:(h + 1) * hd, :],
                            preferred_element_type=jnp.float32)
    attn = acc + bo_ref[...]

    # --- residual + LayerNorm 1 -------------------------------------------------
    x1 = _layernorm(x2d + attn, g1_ref[...], be1_ref[...])

    # --- MLP (d_model -> d_model -> d_model), exact erf-GELU ---------------------
    h1 = jnp.dot(x1.astype(cdt), w1_ref[...],
                 preferred_element_type=jnp.float32) + b1_ref[...]
    h1 = 0.5 * h1 * (1.0 + jax.lax.erf(h1 * (1.0 / math.sqrt(2.0))))
    ffn = jnp.dot(h1.astype(cdt), w2_ref[...],
                  preferred_element_type=jnp.float32) + b2_ref[...]

    # --- residual + LayerNorm 2 --------------------------------------------------
    x2 = _layernorm(x1 + ffn, g2_ref[...], be2_ref[...])
    o_ref[...] = x2.reshape(rb, S, D).astype(o_ref.dtype)


def _vmem_capacity_bytes():
    """Physical VMEM per TensorCore; conservative 64 MiB (v7x) if undetectable."""
    try:
        info = pltpu.get_tpu_info()
        cap = getattr(info, "vmem_capacity_bytes", None)
        if cap:
            return int(cap)
    except Exception:
        pass
    return 64 << 20


def _block_vmem_bytes(rb, S, D, weight_bytes):
    rows = rb * S
    io_bytes = 2 * 2 * rows * D * 4          # double-buffered x + out blocks
    act_bytes = 11 * rows * D * 4            # x2d, qkv(3), acc, attn, x1, h1, ffn, x2 + casts
    score_bytes = 2 * rb * S * S * 4 * 3     # ~2 heads' scores/probs/out live (headroom)
    return weight_bytes + io_bytes + act_bytes + score_bytes


def _choose_rb(B, S, target_rows, est_fn, budget):
    divisors = [d for d in range(1, B + 1) if B % d == 0]
    fitting = [d for d in divisors if est_fn(d) <= budget] or [divisors[0]]
    # Prefer >=2 grid steps when B allows it: v7x megacore sharding + pipelining.
    multi = [d for d in fitting if B // d >= 2]
    cands = multi if multi else fitting
    # Prefer MXU-aligned row counts that reach the target, then any that reach it.
    aligned = [d for d in cands if (d * S) % 128 == 0 and d * S >= target_rows]
    if aligned:
        return aligned[0]
    for d in cands:
        if d * S >= target_rows:
            return d
    return cands[-1]


def encode_block(x, params, n_heads, *, target_rows=None):
    B, S, D = x.shape
    assert D % n_heads == 0, "d_model must be divisible by n_heads"
    hd = D // n_heads
    assert hd % 16 == 0, "head_dim must keep bf16 weight slices sublane-aligned"

    (wq, bq, wk, bk, wv, bv, wo, bo,
     g1, be1, w1, b1, w2, b2, g2, be2) = params

    # Host-side packing/casting (in real use do this once at model init).
    wdt = jnp.bfloat16
    wqkv = jnp.concatenate([wq, wk, wv], axis=1).astype(wdt)       # (D, 3D) bf16
    bqkv = jnp.concatenate([bq, bk, bv], axis=1).astype(jnp.float32)  # (1, 3D) f32
    packed = [wqkv, bqkv, wo.astype(wdt), bo, g1, be1,
              w1.astype(wdt), b1, w2.astype(wdt), b2, g2, be2]
    weight_bytes = sum(int(p.size) * p.dtype.itemsize for p in packed)

    cap = _vmem_capacity_bytes()
    budget = min(cap - (8 << 20), int(cap * 0.85))     # ~54 MiB on v7x, ~108 MiB on v5e/v6e
    if target_rows is None:
        target_rows = 512 if cap >= (96 << 20) else 256

    est_fn = lambda rb: _block_vmem_bytes(rb, S, D, weight_bytes)
    rb = _choose_rb(B, S, target_rows, est_fn, budget)
    grid = (B // rb,)

    vmem_limit = int(min(budget, max(32 << 20, est_fn(rb) * 3 // 2)))

    x_spec = pl.BlockSpec((rb, S, D), lambda i: (i, 0, 0))

    # Grid-invariant params: constant index_map + single buffering.
    def const_spec(shape):
        return pl.BlockSpec(shape, lambda i, _s=len(shape): (0,) * _s,
                            pipeline_mode=pl.Buffered(buffer_count=1))

    param_specs = [const_spec(p.shape) for p in packed]

    return pl.pallas_call(
        functools.partial(encode_block_kernel, n_heads=n_heads),
        out_shape=jax.ShapeDtypeStruct((B, S, D), x.dtype),
        grid_spec=pltpu.PrefetchScalarGridSpec(
            num_scalar_prefetch=0,
            grid=grid,
            in_specs=[x_spec] + param_specs,
            out_specs=x_spec,
        ),
        compiler_params=pltpu.CompilerParams(
            dimension_semantics=("parallel",),
            vmem_limit_bytes=vmem_limit,
        ),
    )(x, *packed)


def _init_params(key, d_model):
    ks = jax.random.split(key, 12)
    sd = 0.02

    def lin(kw, kb):
        w = sd * jax.random.normal(kw, (d_model, d_model), jnp.float32)  # (in, out)
        b = sd * jax.random.normal(kb, (1, d_model), jnp.float32)
        return w, b

    wq, bq = lin(ks[0], ks[1])
    wk, bk = lin(ks[2], ks[3])
    wv, bv = lin(ks[4], ks[5])
    wo, bo = lin(ks[6], ks[7])
    w1, b1 = lin(ks[8], ks[9])
    w2, b2 = lin(ks[10], ks[11])
    g1 = jnp.ones((1, d_model), jnp.float32)
    be1 = jnp.zeros((1, d_model), jnp.float32)
    g2 = jnp.ones((1, d_model), jnp.float32)
    be2 = jnp.zeros((1, d_model), jnp.float32)
    return [wq, bq, wk, bk, wv, bv, wo, bo, g1, be1, w1, b1, w2, b2, g2, be2]


def _reference(x, params, n_heads):
    (wq, bq, wk, bk, wv, bv, wo, bo,
     g1, be1, w1, b1, w2, b2, g2, be2) = params
    B, S, D = x.shape
    hd = D // n_heads

    def split_heads(t):
        return t.reshape(B, S, n_heads, hd).transpose(0, 2, 1, 3)

    q = split_heads(x @ wq + bq)
    k = split_heads(x @ wk + bk)
    v = split_heads(x @ wv + bv)
    s = jnp.einsum("bhqd,bhkd->bhqk", q, k) / math.sqrt(hd)
    p = jax.nn.softmax(s, axis=-1)
    o = jnp.einsum("bhqk,bhkd->bhqd", p, v)
    o = o.transpose(0, 2, 1, 3).reshape(B, S, D)
    attn = o @ wo + bo

    def ln(t, g, b, eps=1e-5):
        mu = t.mean(-1, keepdims=True)
        var = ((t - mu) ** 2).mean(-1, keepdims=True)
        return (t - mu) / jnp.sqrt(var + eps) * g + b

    x1 = ln(x + attn, g1, be1)
    h1 = x1 @ w1 + b1
    h1 = 0.5 * h1 * (1.0 + jax.lax.erf(h1 / math.sqrt(2.0)))
    ffn = h1 @ w2 + b2
    return ln(x1 + ffn, g2, be2)


if __name__ == "__main__":
    # Small lane-dense demo (d_model multiple of 128).  NOTE: perf conclusions
    # should be drawn at S that is a multiple of 128; S=8 here keeps the demo tiny.
    B, S, D, H = 2, 8, 128, 4
    key = jax.random.PRNGKey(0)
    kx, kp = jax.random.split(key)
    x = jax.random.normal(kx, (B, S, D), jnp.float32)
    params = _init_params(kp, D)

    out = jax.block_until_ready(encode_block(x, params, H))

    ref = _reference(x, params, H)
    assert out.shape == (B, S, D)
    # bf16 MXU inputs + approx reciprocal vs. the f32 reference => slightly looser tol.
    assert jnp.allclose(out, ref, atol=3e-2, rtol=3e-2), "mismatch vs JAX reference"

    print("KERNEL_OK")
</pallas_src>

<mosaic_0001>
module attributes {stable_mosaic.version = 11 : i64} {
  func.func @encode_block_kernel(%arg0: i32, %arg1: memref<1x8x128xf32, #tpu.memory_space<vmem>>, %arg2: memref<128x384xbf16, #tpu.memory_space<vmem>>, %arg3: memref<1x384xf32, #tpu.memory_space<vmem>>, %arg4: memref<128x128xbf16, #tpu.memory_space<vmem>>, %arg5: memref<1x128xf32, #tpu.memory_space<vmem>>, %arg6: memref<1x128xf32, #tpu.memory_space<vmem>>, %arg7: memref<1x128xf32, #tpu.memory_space<vmem>>, %arg8: memref<128x128xbf16, #tpu.memory_space<vmem>>, %arg9: memref<1x128xf32, #tpu.memory_space<vmem>>, %arg10: memref<128x128xbf16, #tpu.memory_space<vmem>>, %arg11: memref<1x128xf32, #tpu.memory_space<vmem>>, %arg12: memref<1x128xf32, #tpu.memory_space<vmem>>, %arg13: memref<1x128xf32, #tpu.memory_space<vmem>>, %arg14: memref<1x8x128xf32, #tpu.memory_space<vmem>>) attributes {dimension_semantics = [#tpu.dimension_semantics<parallel>], iteration_bounds = array<i64: 2>, scalar_prefetch = 0 : i64, scratch_operands = 0 : i64, tpu.core_type = #tpu.core_type<tc>, window_params = [{transform_indices = @transform_0, window_bounds = array<i64: 1, 8, 128>}, {pipeline_mode = #tpu.pipeline_mode<synchronous>, transform_indices = @transform_1, window_bounds = array<i64: 128, 384>}, {pipeline_mode = #tpu.pipeline_mode<synchronous>, transform_indices = @transform_2, window_bounds = array<i64: 1, 384>}, {pipeline_mode = #tpu.pipeline_mode<synchronous>, transform_indices = @transform_3, window_bounds = array<i64: 128, 128>}, {pipeline_mode = #tpu.pipeline_mode<synchronous>, transform_indices = @transform_4, window_bounds = array<i64: 1, 128>}, {pipeline_mode = #tpu.pipeline_mode<synchronous>, transform_indices = @transform_5, window_bounds = array<i64: 1, 128>}, {pipeline_mode = #tpu.pipeline_mode<synchronous>, transform_indices = @transform_6, window_bounds = array<i64: 1, 128>}, {pipeline_mode = #tpu.pipeline_mode<synchronous>, transform_indices = @transform_7, window_bounds = array<i64: 128, 128>}, {pipeline_mode = #tpu.pipeline_mode<synchronous>, transform_indices = @transform_8, window_bounds = array<i64: 1, 128>}, {pipeline_mode = #tpu.pipeline_mode<synchronous>, transform_indices = @transform_9, window_bounds = array<i64: 128, 128>}, {pipeline_mode = #tpu.pipeline_mode<synchronous>, transform_indices = @transform_10, window_bounds = array<i64: 1, 128>}, {pipeline_mode = #tpu.pipeline_mode<synchronous>, transform_indices = @transform_11, window_bounds = array<i64: 1, 128>}, {pipeline_mode = #tpu.pipeline_mode<synchronous>, transform_indices = @transform_12, window_bounds = array<i64: 1, 128>}, {transform_indices = @transform_13, window_bounds = array<i64: 1, 8, 128>}]} {
    %c0 = arith.constant 0 : index
    %c0_0 = arith.constant 0 : index
    %c0_1 = arith.constant 0 : index
    %0 = vector.load %arg1[%c0, %c0_0, %c0_1] : memref<1x8x128xf32, #tpu.memory_space<vmem>>, vector<1x8x128xf32>
    %1 = vector.shape_cast %0 : vector<1x8x128xf32> to vector<8x128xf32>
    %2 = arith.truncf %1 : vector<8x128xf32> to vector<8x128xbf16>
    %c0_2 = arith.constant 0 : index
    %c0_3 = arith.constant 0 : index
    %3 = vector.load %arg2[%c0_2, %c0_3] : memref<128x384xbf16, #tpu.memory_space<vmem>>, vector<128x384xbf16>
    %cst = arith.constant dense<0.000000e+00> : vector<8x384xf32>
    %4 = tpu.matmul %2, %3, %cst {dimension_numbers = #tpu.dot_dimension_numbers<[1], [0], [0], [1], [0, 0, 1, 1], [], []>} : vector<8x128xbf16>, vector<128x384xbf16>, vector<8x384xf32> -> vector<8x384xf32>
    %c0_4 = arith.constant 0 : index
    %c0_5 = arith.constant 0 : index
    %5 = vector.load %arg3[%c0_4, %c0_5] : memref<1x384xf32, #tpu.memory_space<vmem>>, vector<1x384xf32>
    %6 = vector.broadcast %5 : vector<1x384xf32> to vector<8x384xf32>
    %7 = arith.addf %4, %6 : vector<8x384xf32>
    %8 = vector.shape_cast %7 : vector<8x384xf32> to vector<1x8x384xf32>
    %cst_6 = arith.constant 0.000000e+00 : f32
    %9 = vector.broadcast %cst_6 : f32 to vector<8x128xf32>
    %10 = vector.extract_strided_slice %8 {offsets = [0, 0, 0], sizes = [1, 8, 32], strides = [1, 1, 1]} : vector<1x8x384xf32> to vector<1x8x32xf32>
    %11 = arith.truncf %10 : vector<1x8x32xf32> to vector<1x8x32xbf16>
    %12 = vector.extract_strided_slice %8 {offsets = [0, 0, 128], sizes = [1, 8, 32], strides = [1, 1, 1]} : vector<1x8x384xf32> to vector<1x8x32xf32>
    %13 = arith.truncf %12 : vector<1x8x32xf32> to vector<1x8x32xbf16>
    %14 = vector.extract_strided_slice %8 {offsets = [0, 0, 256], sizes = [1, 8, 32], strides = [1, 1, 1]} : vector<1x8x384xf32> to vector<1x8x32xf32>
    %15 = arith.truncf %14 : vector<1x8x32xf32> to vector<1x8x32xbf16>
    "tpu.trace_start"() <{level = 10 : i32, message = "bqd,bkd->bqk"}> : () -> ()
    %cst_7 = arith.constant dense<0.000000e+00> : vector<1x8x8xf32>
    %16 = tpu.matmul %11, %13, %cst_7 {dimension_numbers = #tpu.dot_dimension_numbers<[2], [2], [1], [1], [0, 0, 0, 1, 1, 1], [0], [0]>} : vector<1x8x32xbf16>, vector<1x8x32xbf16>, vector<1x8x8xf32> -> vector<1x8x8xf32>
    "tpu.trace_stop"() : () -> ()
    %cst_8 = arith.constant 0.176776692 : f32
    %17 = vector.broadcast %cst_8 : f32 to vector<1x8x8xf32>
    %18 = arith.mulf %16, %17 : vector<1x8x8xf32>
    %cst_9 = arith.constant dense<0xFF800000> : vector<1x8xf32>
    %19 = vector.multi_reduction <maximumf>, %18, %cst_9 [2] : vector<1x8x8xf32> to vector<1x8xf32>
    %20 = vector.shape_cast %19 : vector<1x8xf32> to vector<1x8x1xf32>
    %21 = vector.broadcast %20 : vector<1x8x1xf32> to vector<1x8x8xf32>
    %22 = arith.subf %18, %21 : vector<1x8x8xf32>
    %23 = math.exp %22 : vector<1x8x8xf32>
    %cst_10 = arith.constant dense<0.000000e+00> : vector<1x8xf32>
    %24 = vector.multi_reduction <add>, %23, %cst_10 [2] : vector<1x8x8xf32> to vector<1x8xf32>
    %25 = vector.shape_cast %24 : vector<1x8xf32> to vector<1x8x1xf32>
    %26 = tpu.reciprocal %25 {approx = true} : vector<1x8x1xf32> -> vector<1x8x1xf32>
    %27 = vector.broadcast %26 : vector<1x8x1xf32> to vector<1x8x8xf32>
    %28 = arith.mulf %23, %27 : vector<1x8x8xf32>
    %29 = arith.truncf %28 : vector<1x8x8xf32> to vector<1x8x8xbf16>
    "tpu.trace_start"() <{level = 10 : i32, message = "bqk,bkd->bqd"}> : () -> ()
    %cst_11 = arith.constant dense<0.000000e+00> : vector<1x8x32xf32>
    %30 = tpu.matmul %29, %15, %cst_11 {dimension_numbers = #tpu.dot_dimension_numbers<[2], [1], [1], [2], [0, 0, 0, 1, 1, 2], [0], [0]>} : vector<1x8x8xbf16>, vector<1x8x32xbf16>, vector<1x8x32xf32> -> vector<1x8x32xf32>
    "tpu.trace_stop"() : () -> ()
    %31 = vector.shape_cast %30 : vector<1x8x32xf32> to vector<8x32xf32>
    %32 = arith.truncf %31 : vector<8x32xf32> to vector<8x32xbf16>
    %c0_12 = arith.constant 0 : index
    %c0_13 = arith.constant 0 : index
    %33 = vector.load %arg4[%c0_12, %c0_13] : memref<128x128xbf16, #tpu.memory_space<vmem>>, vector<32x128xbf16>
    %cst_14 = arith.constant dense<0.000000e+00> : vector<8x128xf32>
    %34 = tpu.matmul %32, %33, %cst_14 {dimension_numbers = #tpu.dot_dimension_numbers<[1], [0], [0], [1], [0, 0, 1, 1], [], []>} : vector<8x32xbf16>, vector<32x128xbf16>, vector<8x128xf32> -> vector<8x128xf32>
    %35 = arith.addf %9, %34 : vector<8x128xf32>
    %36 = vector.extract_strided_slice %8 {offsets = [0, 0, 32], sizes = [1, 8, 32], strides = [1, 1, 1]} : vector<1x8x384xf32> to vector<1x8x32xf32>
    %37 = arith.truncf %36 : vector<1x8x32xf32> to vector<1x8x32xbf16>
    %38 = vector.extract_strided_slice %8 {offsets = [0, 0, 160], sizes = [1, 8, 32], strides = [1, 1, 1]} : vector<1x8x384xf32> to vector<1x8x32xf32>
    %39 = arith.truncf %38 : vector<1x8x32xf32> to vector<1x8x32xbf16>
    %40 = vector.extract_strided_slice %8 {offsets = [0, 0, 288], sizes = [1, 8, 32], strides = [1, 1, 1]} : vector<1x8x384xf32> to vector<1x8x32xf32>
    %41 = arith.truncf %40 : vector<1x8x32xf32> to vector<1x8x32xbf16>
    "tpu.trace_start"() <{level = 10 : i32, message = "bqd,bkd->bqk"}> : () -> ()
    %cst_15 = arith.constant dense<0.000000e+00> : vector<1x8x8xf32>
    %42 = tpu.matmul %37, %39, %cst_15 {dimension_numbers = #tpu.dot_dimension_numbers<[2], [2], [1], [1], [0, 0, 0, 1, 1, 1], [0], [0]>} : vector<1x8x32xbf16>, vector<1x8x32xbf16>, vector<1x8x8xf32> -> vector<1x8x8xf32>
    "tpu.trace_stop"() : () -> ()
    %cst_16 = arith.constant 0.176776692 : f32
    %43 = vector.broadcast %cst_16 : f32 to vector<1x8x8xf32>
    %44 = arith.mulf %42, %43 : vector<1x8x8xf32>
    %cst_17 = arith.constant dense<0xFF800000> : vector<1x8xf32>
    %45 = vector.multi_reduction <maximumf>, %44, %cst_17 [2] : vector<1x8x8xf32> to vector<1x8xf32>
    %46 = vector.shape_cast %45 : vector<1x8xf32> to vector<1x8x1xf32>
    %47 = vector.broadcast %46 : vector<1x8x1xf32> to vector<1x8x8xf32>
    %48 = arith.subf %44, %47 : vector<1x8x8xf32>
    %49 = math.exp %48 : vector<1x8x8xf32>
    %cst_18 = arith.constant dense<0.000000e+00> : vector<1x8xf32>
    %50 = vector.multi_reduction <add>, %49, %cst_18 [2] : vector<1x8x8xf32> to vector<1x8xf32>
    %51 = vector.shape_cast %50 : vector<1x8xf32> to vector<1x8x1xf32>
    %52 = tpu.reciprocal %51 {approx = true} : vector<1x8x1xf32> -> vector<1x8x1xf32>
    %53 = vector.broadcast %52 : vector<1x8x1xf32> to vector<1x8x8xf32>
    %54 = arith.mulf %49, %53 : vector<1x8x8xf32>
    %55 = arith.truncf %54 : vector<1x8x8xf32> to vector<1x8x8xbf16>
    "tpu.trace_start"() <{level = 10 : i32, message = "bqk,bkd->bqd"}> : () -> ()
    %cst_19 = arith.constant dense<0.000000e+00> : vector<1x8x32xf32>
    %56 = tpu.matmul %55, %41, %cst_19 {dimension_numbers = #tpu.dot_dimension_numbers<[2], [1], [1], [2], [0, 0, 0, 1, 1, 2], [0], [0]>} : vector<1x8x8xbf16>, vector<1x8x32xbf16>, vector<1x8x32xf32> -> vector<1x8x32xf32>
    "tpu.trace_stop"() : () -> ()
    %57 = vector.shape_cast %56 : vector<1x8x32xf32> to vector<8x32xf32>
    %58 = arith.truncf %57 : vector<8x32xf32> to vector<8x32xbf16>
    %c32 = arith.constant 32 : index
    %c0_20 = arith.constant 0 : index
    %59 = vector.load %arg4[%c32, %c0_20] : memref<128x128xbf16, #tpu.memory_space<vmem>>, vector<32x128xbf16>
    %cst_21 = arith.constant dense<0.000000e+00> : vector<8x128xf32>
    %60 = tpu.matmul %58, %59, %cst_21 {dimension_numbers = #tpu.dot_dimension_numbers<[1], [0], [0], [1], [0, 0, 1, 1], [], []>} : vector<8x32xbf16>, vector<32x128xbf16>, vector<8x128xf32> -> vector<8x128xf32>
    %61 = arith.addf %35, %60 : vector<8x128xf32>
    %62 = vector.extract_strided_slice %8 {offsets = [0, 0, 64], sizes = [1, 8, 32], strides = [1, 1, 1]} : vector<1x8x384xf32> to vector<1x8x32xf32>
    %63 = arith.truncf %62 : vector<1x8x32xf32> to vector<1x8x32xbf16>
    %64 = vector.extract_strided_slice %8 {offsets = [0, 0, 192], sizes = [1, 8, 32], strides = [1, 1, 1]} : vector<1x8x384xf32> to vector<1x8x32xf32>
    %65 = arith.truncf %64 : vector<1x8x32xf32> to vector<1x8x32xbf16>
    %66 = vector.extract_strided_slice %8 {offsets = [0, 0, 320], sizes = [1, 8, 32], strides = [1, 1, 1]} : vector<1x8x384xf32> to vector<1x8x32xf32>
    %67 = arith.truncf %66 : vector<1x8x32xf32> to vector<1x8x32xbf16>
    "tpu.trace_start"() <{level = 10 : i32, message = "bqd,bkd->bqk"}> : () -> ()
    %cst_22 = arith.constant dense<0.000000e+00> : vector<1x8x8xf32>
    %68 = tpu.matmul %63, %65, %cst_22 {dimension_numbers = #tpu.dot_dimension_numbers<[2], [2], [1], [1], [0, 0, 0, 1, 1, 1], [0], [0]>} : vector<1x8x32xbf16>, vector<1x8x32xbf16>, vector<1x8x8xf32> -> vector<1x8x8xf32>
    "tpu.trace_stop"() : () -> ()
    %cst_23 = arith.constant 0.176776692 : f32
    %69 = vector.broadcast %cst_23 : f32 to vector<1x8x8xf32>
    %70 = arith.mulf %68, %69 : vector<1x8x8xf32>
    %cst_24 = arith.constant dense<0xFF800000> : vector<1x8xf32>
    %71 = vector.multi_reduction <maximumf>, %70, %cst_24 [2] : vector<1x8x8xf32> to vector<1x8xf32>
    %72 = vector.shape_cast %71 : vector<1x8xf32> to vector<1x8x1xf32>
    %73 = vector.broadcast %72 : vector<1x8x1xf32> to vector<1x8x8xf32>
    %74 = arith.subf %70, %73 : vector<1x8x8xf32>
    %75 = math.exp %74 : vector<1x8x8xf32>
    %cst_25 = arith.constant dense<0.000000e+00> : vector<1x8xf32>
    %76 = vector.multi_reduction <add>, %75, %cst_25 [2] : vector<1x8x8xf32> to vector<1x8xf32>
    %77 = vector.shape_cast %76 : vector<1x8xf32> to vector<1x8x1xf32>
    %78 = tpu.reciprocal %77 {approx = true} : vector<1x8x1xf32> -> vector<1x8x1xf32>
    %79 = vector.broadcast %78 : vector<1x8x1xf32> to vector<1x8x8xf32>
    %80 = arith.mulf %75, %79 : vector<1x8x8xf32>
    %81 = arith.truncf %80 : vector<1x8x8xf32> to vector<1x8x8xbf16>
    "tpu.trace_start"() <{level = 10 : i32, message = "bqk,bkd->bqd"}> : () -> ()
    %cst_26 = arith.constant dense<0.000000e+00> : vector<1x8x32xf32>
    %82 = tpu.matmul %81, %67, %cst_26 {dimension_numbers = #tpu.dot_dimension_numbers<[2], [1], [1], [2], [0, 0, 0, 1, 1, 2], [0], [0]>} : vector<1x8x8xbf16>, vector<1x8x32xbf16>, vector<1x8x32xf32> -> vector<1x8x32xf32>
    "tpu.trace_stop"() : () -> ()
    %83 = vector.shape_cast %82 : vector<1x8x32xf32> to vector<8x32xf32>
    %84 = arith.truncf %83 : vector<8x32xf32> to vector<8x32xbf16>
    %c64 = arith.constant 64 : index
    %c0_27 = arith.constant 0 : index
    %85 = vector.load %arg4[%c64, %c0_27] : memref<128x128xbf16, #tpu.memory_space<vmem>>, vector<32x128xbf16>
    %cst_28 = arith.constant dense<0.000000e+00> : vector<8x128xf32>
    %86 = tpu.matmul %84, %85, %cst_28 {dimension_numbers = #tpu.dot_dimension_numbers<[1], [0], [0], [1], [0, 0, 1, 1], [], []>} : vector<8x32xbf16>, vector<32x128xbf16>, vector<8x128xf32> -> vector<8x128xf32>
    %87 = arith.addf %61, %86 : vector<8x128xf32>
    %88 = vector.extract_strided_slice %8 {offsets = [0, 0, 96], sizes = [1, 8, 32], strides = [1, 1, 1]} : vector<1x8x384xf32> to vector<1x8x32xf32>
    %89 = arith.truncf %88 : vector<1x8x32xf32> to vector<1x8x32xbf16>
    %90 = vector.extract_strided_slice %8 {offsets = [0, 0, 224], sizes = [1, 8, 32], strides = [1, 1, 1]} : vector<1x8x384xf32> to vector<1x8x32xf32>
    %91 = arith.truncf %90 : vector<1x8x32xf32> to vector<1x8x32xbf16>
    %92 = vector.extract_strided_slice %8 {offsets = [0, 0, 352], sizes = [1, 8, 32], strides = [1, 1, 1]} : vector<1x8x384xf32> to vector<1x8x32xf32>
    %93 = arith.truncf %92 : vector<1x8x32xf32> to vector<1x8x32xbf16>
    "tpu.trace_start"() <{level = 10 : i32, message = "bqd,bkd->bqk"}> : () -> ()
    %cst_29 = arith.constant dense<0.000000e+00> : vector<1x8x8xf32>
    %94 = tpu.matmul %89, %91, %cst_29 {dimension_numbers = #tpu.dot_dimension_numbers<[2], [2], [1], [1], [0, 0, 0, 1, 1, 1], [0], [0]>} : vector<1x8x32xbf16>, vector<1x8x32xbf16>, vector<1x8x8xf32> -> vector<1x8x8xf32>
    "tpu.trace_stop"() : () -> ()
    %cst_30 = arith.constant 0.176776692 : f32
    %95 = vector.broadcast %cst_30 : f32 to vector<1x8x8xf32>
    %96 = arith.mulf %94, %95 : vector<1x8x8xf32>
    %cst_31 = arith.constant dense<0xFF800000> : vector<1x8xf32>
    %97 = vector.multi_reduction <maximumf>, %96, %cst_31 [2] : vector<1x8x8xf32> to vector<1x8xf32>
    %98 = vector.shape_cast %97 : vector<1x8xf32> to vector<1x8x1xf32>
    %99 = vector.broadcast %98 : vector<1x8x1xf32> to vector<1x8x8xf32>
    %100 = arith.subf %96, %99 : vector<1x8x8xf32>
    %101 = math.exp %100 : vector<1x8x8xf32>
    %cst_32 = arith.constant dense<0.000000e+00> : vector<1x8xf32>
    %102 = vector.multi_reduction <add>, %101, %cst_32 [2] : vector<1x8x8xf32> to vector<1x8xf32>
    %103 = vector.shape_cast %102 : vector<1x8xf32> to vector<1x8x1xf32>
    %104 = tpu.reciprocal %103 {approx = true} : vector<1x8x1xf32> -> vector<1x8x1xf32>
    %105 = vector.broadcast %104 : vector<1x8x1xf32> to vector<1x8x8xf32>
    %106 = arith.mulf %101, %105 : vector<1x8x8xf32>
    %107 = arith.truncf %106 : vector<1x8x8xf32> to vector<1x8x8xbf16>
    "tpu.trace_start"() <{level = 10 : i32, message = "bqk,bkd->bqd"}> : () -> ()
    %cst_33 = arith.constant dense<0.000000e+00> : vector<1x8x32xf32>
    %108 = tpu.matmul %107, %93, %cst_33 {dimension_numbers = #tpu.dot_dimension_numbers<[2], [1], [1], [2], [0, 0, 0, 1, 1, 2], [0], [0]>} : vector<1x8x8xbf16>, vector<1x8x32xbf16>, vector<1x8x32xf32> -> vector<1x8x32xf32>
    "tpu.trace_stop"() : () -> ()
    %109 = vector.shape_cast %108 : vector<1x8x32xf32> to vector<8x32xf32>
    %110 = arith.truncf %109 : vector<8x32xf32> to vector<8x32xbf16>
    %c96 = arith.constant 96 : index
    %c0_34 = arith.constant 0 : index
    %111 = vector.load %arg4[%c96, %c0_34] : memref<128x128xbf16, #tpu.memory_space<vmem>>, vector<32x128xbf16>
    %cst_35 = arith.constant dense<0.000000e+00> : vector<8x128xf32>
    %112 = tpu.matmul %110, %111, %cst_35 {dimension_numbers = #tpu.dot_dimension_numbers<[1], [0], [0], [1], [0, 0, 1, 1], [], []>} : vector<8x32xbf16>, vector<32x128xbf16>, vector<8x128xf32> -> vector<8x128xf32>
    %113 = arith.addf %87, %112 : vector<8x128xf32>
    %c0_36 = arith.constant 0 : index
    %c0_37 = arith.constant 0 : index
    %114 = vector.load %arg5[%c0_36, %c0_37] : memref<1x128xf32, #tpu.memory_space<vmem>>, vector<1x128xf32>
    %115 = vector.broadcast %114 : vector<1x128xf32> to vector<8x128xf32>
    %116 = arith.addf %113, %115 : vector<8x128xf32>
    %117 = arith.addf %1, %116 : vector<8x128xf32>
    %c0_38 = arith.constant 0 : index
    %c0_39 = arith.constant 0 : index
    %118 = vector.load %arg6[%c0_38, %c0_39] : memref<1x128xf32, #tpu.memory_space<vmem>>, vector<1x128xf32>
    %c0_40 = arith.constant 0 : index
    %c0_41 = arith.constant 0 : index
    %119 = vector.load %arg7[%c0_40, %c0_41] : memref<1x128xf32, #tpu.memory_space<vmem>>, vector<1x128xf32>
    %cst_42 = arith.constant dense<0.000000e+00> : vector<8xf32>
    %120 = vector.multi_reduction <add>, %117, %cst_42 [1] : vector<8x128xf32> to vector<8xf32>
    %121 = vector.shape_cast %120 : vector<8xf32> to vector<8x1xf32>
    %cst_43 = arith.constant 1.280000e+02 : f32
    %122 = vector.broadcast %cst_43 : f32 to vector<8x1xf32>
    %123 = arith.divf %121, %122 : vector<8x1xf32>
    %124 = vector.broadcast %123 : vector<8x1xf32> to vector<8x128xf32>
    %125 = arith.subf %117, %124 : vector<8x128xf32>
    %126 = arith.mulf %125, %125 : vector<8x128xf32>
    %cst_44 = arith.constant dense<0.000000e+00> : vector<8xf32>
    %127 = vector.multi_reduction <add>, %126, %cst_44 [1] : vector<8x128xf32> to vector<8xf32>
    %128 = vector.shape_cast %127 : vector<8xf32> to vector<8x1xf32>
    %cst_45 = arith.constant 1.280000e+02 : f32
    %129 = vector.broadcast %cst_45 : f32 to vector<8x1xf32>
    %130 = arith.divf %128, %129 : vector<8x1xf32>
    %131 = vector.broadcast %123 : vector<8x1xf32> to vector<8x128xf32>
    %132 = arith.subf %117, %131 : vector<8x128xf32>
    %cst_46 = arith.constant 9.99999974E-6 : f32
    %133 = vector.broadcast %cst_46 : f32 to vector<8x1xf32>
    %134 = arith.addf %130, %133 : vector<8x1xf32>
    %135 = math.rsqrt %134 : vector<8x1xf32>
    %136 = vector.broadcast %135 : vector<8x1xf32> to vector<8x128xf32>
    %137 = arith.mulf %132, %136 : vector<8x128xf32>
    %138 = vector.broadcast %118 : vector<1x128xf32> to vector<8x128xf32>
    %139 = arith.mulf %137, %138 : vector<8x128xf32>
    %140 = vector.broadcast %119 : vector<1x128xf32> to vector<8x128xf32>
    %141 = arith.addf %139, %140 : vector<8x128xf32>
    %142 = arith.truncf %141 : vector<8x128xf32> to vector<8x128xbf16>
    %c0_47 = arith.constant 0 : index
    %c0_48 = arith.constant 0 : index
    %143 = vector.load %arg8[%c0_47, %c0_48] : memref<128x128xbf16, #tpu.memory_space<vmem>>, vector<128x128xbf16>
    %cst_49 = arith.constant dense<0.000000e+00> : vector<8x128xf32>
    %144 = tpu.matmul %142, %143, %cst_49 {dimension_numbers = #tpu.dot_dimension_numbers<[1], [0], [0], [1], [0, 0, 1, 1], [], []>} : vector<8x128xbf16>, vector<128x128xbf16>, vector<8x128xf32> -> vector<8x128xf32>
    %c0_50 = arith.constant 0 : index
    %c0_51 = arith.constant 0 : index
    %145 = vector.load %arg9[%c0_50, %c0_51] : memref<1x128xf32, #tpu.memory_space<vmem>>, vector<1x128xf32>
    %146 = vector.broadcast %145 : vector<1x128xf32> to vector<8x128xf32>
    %147 = arith.addf %144, %146 : vector<8x128xf32>
    %cst_52 = arith.constant 5.000000e-01 : f32
    %148 = vector.broadcast %cst_52 : f32 to vector<8x128xf32>
    %149 = arith.mulf %148, %147 : vector<8x128xf32>
    %cst_53 = arith.constant 0.707106769 : f32
    %150 = vector.broadcast %cst_53 : f32 to vector<8x128xf32>
    %151 = arith.mulf %147, %150 : vector<8x128xf32>
    %152 = math.erf %151 : vector<8x128xf32>
    %cst_54 = arith.constant 1.000000e+00 : f32
    %153 = vector.broadcast %cst_54 : f32 to vector<8x128xf32>
    %154 = arith.addf %153, %152 : vector<8x128xf32>
    %155 = arith.mulf %149, %154 : vector<8x128xf32>
    %156 = arith.truncf %155 : vector<8x128xf32> to vector<8x128xbf16>
    %c0_55 = arith.constant 0 : index
    %c0_56 = arith.constant 0 : index
    %157 = vector.load %arg10[%c0_55, %c0_56] : memref<128x128xbf16, #tpu.memory_space<vmem>>, vector<128x128xbf16>
    %cst_57 = arith.constant dense<0.000000e+00> : vector<8x128xf32>
    %158 = tpu.matmul %156, %157, %cst_57 {dimension_numbers = #tpu.dot_dimension_numbers<[1], [0], [0], [1], [0, 0, 1, 1], [], []>} : vector<8x128xbf16>, vector<128x128xbf16>, vector<8x128xf32> -> vector<8x128xf32>
    %c0_58 = arith.constant 0 : index
    %c0_59 = arith.constant 0 : index
    %159 = vector.load %arg11[%c0_58, %c0_59] : memref<1x128xf32, #tpu.memory_space<vmem>>, vector<1x128xf32>
    %160 = vector.broadcast %159 : vector<1x128xf32> to vector<8x128xf32>
    %161 = arith.addf %158, %160 : vector<8x128xf32>
    %162 = arith.addf %141, %161 : vector<8x128xf32>
    %c0_60 = arith.constant 0 : index
    %c0_61 = arith.constant 0 : index
    %163 = vector.load %arg12[%c0_60, %c0_61] : memref<1x128xf32, #tpu.memory_space<vmem>>, vector<1x128xf32>
    %c0_62 = arith.constant 0 : index
    %c0_63 = arith.constant 0 : index
    %164 = vector.load %arg13[%c0_62, %c0_63] : memref<1x128xf32, #tpu.memory_space<vmem>>, vector<1x128xf32>
    %cst_64 = arith.constant dense<0.000000e+00> : vector<8xf32>
    %165 = vector.multi_reduction <add>, %162, %cst_64 [1] : vector<8x128xf32> to vector<8xf32>
    %166 = vector.shape_cast %165 : vector<8xf32> to vector<8x1xf32>
    %cst_65 = arith.constant 1.280000e+02 : f32
    %167 = vector.broadcast %cst_65 : f32 to vector<8x1xf32>
    %168 = arith.divf %166, %167 : vector<8x1xf32>
    %169 = vector.broadcast %168 : vector<8x1xf32> to vector<8x128xf32>
    %170 = arith.subf %162, %169 : vector<8x128xf32>
    %171 = arith.mulf %170, %170 : vector<8x128xf32>
    %cst_66 = arith.constant dense<0.000000e+00> : vector<8xf32>
    %172 = vector.multi_reduction <add>, %171, %cst_66 [1] : vector<8x128xf32> to vector<8xf32>
    %173 = vector.shape_cast %172 : vector<8xf32> to vector<8x1xf32>
    %cst_67 = arith.constant 1.280000e+02 : f32
    %174 = vector.broadcast %cst_67 : f32 to vector<8x1xf32>
    %175 = arith.divf %173, %174 : vector<8x1xf32>
    %176 = vector.broadcast %168 : vector<8x1xf32> to vector<8x128xf32>
    %177 = arith.subf %162, %176 : vector<8x128xf32>
    %cst_68 = arith.constant 9.99999974E-6 : f32
    %178 = vector.broadcast %cst_68 : f32 to vector<8x1xf32>
    %179 = arith.addf %175, %178 : vector<8x1xf32>
    %180 = math.rsqrt %179 : vector<8x1xf32>
    %181 = vector.broadcast %180 : vector<8x1xf32> to vector<8x128xf32>
    %182 = arith.mulf %177, %181 : vector<8x128xf32>
    %183 = vector.broadcast %163 : vector<1x128xf32> to vector<8x128xf32>
    %184 = arith.mulf %182, %183 : vector<8x128xf32>
    %185 = vector.broadcast %164 : vector<1x128xf32> to vector<8x128xf32>
    %186 = arith.addf %184, %185 : vector<8x128xf32>
    %187 = vector.shape_cast %186 : vector<8x128xf32> to vector<1x8x128xf32>
    %c0_69 = arith.constant 0 : index
    %c0_70 = arith.constant 0 : index
    %c0_71 = arith.constant 0 : index
    %188 = vector.load %arg14[%c0_69, %c0_70, %c0_71] : memref<1x8x128xf32, #tpu.memory_space<vmem>>, vector<1x8x128xf32>
    tpu.vector_store %arg14[%c0_69, %c0_70, %c0_71], %187 {strides = array<i32>} : memref<1x8x128xf32, #tpu.memory_space<vmem>>, vector<1x8x128xf32>,
    return
  }
  func.func @transform_0(%arg0: i32) -> (i32, i32, i32) {
    %c0_i32 = arith.constant 0 : i32
    %c0_i32_0 = arith.constant 0 : i32
    %c0_i32_1 = arith.constant 0 : i32
    return %arg0, %c0_i32, %c0_i32_0 : i32, i32, i32
  }
  func.func @transform_1(%arg0: i32) -> (i32, i32) {
    %c0_i32 = arith.constant 0 : i32
    %c0_i32_0 = arith.constant 0 : i32
    %c0_i32_1 = arith.constant 0 : i32
    return %c0_i32, %c0_i32_0 : i32, i32
  }
  func.func @transform_2(%arg0: i32) -> (i32, i32) {
    %c0_i32 = arith.constant 0 : i32
    %c0_i32_0 = arith.constant 0 : i32
    %c0_i32_1 = arith.constant 0 : i32
    return %c0_i32, %c0_i32_0 : i32, i32
  }
  func.func @transform_3(%arg0: i32) -> (i32, i32) {
    %c0_i32 = arith.constant 0 : i32
    %c0_i32_0 = arith.constant 0 : i32
    %c0_i32_1 = arith.constant 0 : i32
    return %c0_i32, %c0_i32_0 : i32, i32
  }
  func.func @transform_4(%arg0: i32) -> (i32, i32) {
    %c0_i32 = arith.constant 0 : i32
    %c0_i32_0 = arith.constant 0 : i32
    %c0_i32_1 = arith.constant 0 : i32
    return %c0_i32, %c0_i32_0 : i32, i32
  }
  func.func @transform_5(%arg0: i32) -> (i32, i32) {
    %c0_i32 = arith.constant 0 : i32
    %c0_i32_0 = arith.constant 0 : i32
    %c0_i32_1 = arith.constant 0 : i32
    return %c0_i32, %c0_i32_0 : i32, i32
  }
  func.func @transform_6(%arg0: i32) -> (i32, i32) {
    %c0_i32 = arith.constant 0 : i32
    %c0_i32_0 = arith.constant 0 : i32
    %c0_i32_1 = arith.constant 0 : i32
    return %c0_i32, %c0_i32_0 : i32, i32
  }
  func.func @transform_7(%arg0: i32) -> (i32, i32) {
    %c0_i32 = arith.constant 0 : i32
    %c0_i32_0 = arith.constant 0 : i32
    %c0_i32_1 = arith.constant 0 : i32
    return %c0_i32, %c0_i32_0 : i32, i32
  }
  func.func @transform_8(%arg0: i32) -> (i32, i32) {
    %c0_i32 = arith.constant 0 : i32
    %c0_i32_0 = arith.constant 0 : i32
    %c0_i32_1 = arith.constant 0 : i32
    return %c0_i32, %c0_i32_0 : i32, i32
  }
  func.func @transform_9(%arg0: i32) -> (i32, i32) {
    %c0_i32 = arith.constant 0 : i32
    %c0_i32_0 = arith.constant 0 : i32
    %c0_i32_1 = arith.constant 0 : i32
    return %c0_i32, %c0_i32_0 : i32, i32
  }
  func.func @transform_10(%arg0: i32) -> (i32, i32) {
    %c0_i32 = arith.constant 0 : i32
    %c0_i32_0 = arith.constant 0 : i32
    %c0_i32_1 = arith.constant 0 : i32
    return %c0_i32, %c0_i32_0 : i32, i32
  }
  func.func @transform_11(%arg0: i32) -> (i32, i32) {
    %c0_i32 = arith.constant 0 : i32
    %c0_i32_0 = arith.constant 0 : i32
    %c0_i32_1 = arith.constant 0 : i32
    return %c0_i32, %c0_i32_0 : i32, i32
  }
  func.func @transform_12(%arg0: i32) -> (i32, i32) {
    %c0_i32 = arith.constant 0 : i32
    %c0_i32_0 = arith.constant 0 : i32
    %c0_i32_1 = arith.constant 0 : i32
    return %c0_i32, %c0_i32_0 : i32, i32
  }
  func.func @transform_13(%arg0: i32) -> (i32, i32, i32) {
    %c0_i32 = arith.constant 0 : i32
    %c0_i32_0 = arith.constant 0 : i32
    %c0_i32_1 = arith.constant 0 : i32
    return %arg0, %c0_i32, %c0_i32_0 : i32, i32, i32
  }
}

</mosaic_0001>

<bundles_post_ra>
// kernel: tpu_custom_call.1
= control target key start
LH: loop header
LB: loop body
LE: loop exit
PB: predicated region body
PF: predicated region fallthrough
CT: control target
= control target key end

     0   :  { %s3003_s0 = inlined_call_operand.hbm [shape: f32[2,8,128], index: 0, kind: input, shape index: {}]   ;;  %s3004_s1 = inlined_call_operand.hbm [shape: bf16[128,384], index: 1, kind: input, shape index: {}]   ;;  %s3005_s2 = inlined_call_operand.vmem [shape: f32[1,384], index: 2, kind: input, shape index: {}]   ;;  %s3006_s3 = inlined_call_operand.hbm [shape: bf16[128,128], index: 3, kind: input, shape index: {}]   ;;  %s3007_s4 = inlined_call_operand.vmem [shape: f32[1,128], index: 4, kind: input, shape index: {}]   ;;  %s3008_s5 = inlined_call_operand.vmem [shape: f32[1,128], index: 5, kind: input, shape index: {}]   ;;  %s3009_s6 = inlined_call_operand.vmem [shape: f32[1,128], index: 6, kind: input, shape index: {}]   ;;  %s3010_s7 = inlined_call_operand.hbm [shape: bf16[128,128], index: 7, kind: input, shape index: {}]   ;;  %s3011_s8 = inlined_call_operand.vmem [shape: f32[1,128], index: 8, kind: input, shape index: {}]   ;;  %s3012_s9 = inlined_call_operand.hbm [shape: bf16[128,128], index: 9, kind: input, shape index: {}]   ;;  %s3013_s10 = inlined_call_operand.vmem [shape: f32[1,128], index: 10, kind: input, shape index: {}]   ;;  %s3014_s11 = inlined_call_operand.vmem [shape: f32[1,128], index: 11, kind: input, shape index: {}]   ;;  %s3015_s12 = inlined_call_operand.vmem [shape: f32[1,128], index: 12, kind: input, shape index: {}]   ;;  %s3016_s13 = inlined_call_operand.hbm [shape: f32[2,8,128], index: 13, kind: output, shape index: {}]  }
   0x1   :  { %3025 = sst [smem:[#allocation20_spill]] %s3004_s1 }
   0x2   :  { %3026 = sst [smem:[#allocation21_spill]] %s3006_s3 }
   0x3   :  { %3027 = sst [smem:[#allocation22_spill]] %s3010_s7 }
   0x4   :  { %3028 = sst [smem:[#allocation23_spill]] %s3012_s9 }
   0x5   :  { %18 = vsyncpa [#allocation3], 0 }
   0x6   :  { %20 = vsyncpa [#allocation3 + $0x1], 0 }
   0x7   :  { %21 = vsyncpa [#allocation6], 0 }
   0x8   :  { %22 = vsyncpa [#allocation9], 0 }
   0x9   :  { %23 = vsyncpa [#allocation4], 0 }
   0xa   :  { %25 = vsyncpa [#allocation4 + $0x1], 0  ;;  %s2630_s25 = smov 0   ;;  %s2632_s26 = smov 0  }
   0xb   :  { %s2634_s27 = smov 0   ;;  %s2636_s28 = smov 0  }
   0xc LB: > { %3029 = sst [smem:[#allocation16_spill]] %s2538_s27  ;;  %s2544_s29 = smov [#allocation5]   ;;  %s2542_s28 = sphi %s2636_s28, %s3054_s28   ;;  %s2538_s27 = sphi %s2634_s27, %s3056_s27   ;;  %s2534_s26 = sphi %s2632_s26, %s3058_s26   ;;  %s2530_s25 = sphi %s2630_s25, %s3057_s25  }
   0xd   : > { %3030 = sst [smem:[#allocation17_spill]] %s2542_s28  ;;  %s352_s30 = sshll.u32 %s2544_s29, 4  ;;  %s353_s30 = int_to_ptr.vmem [resolvable:$true] %s352_s30 }
   0xe   : > { %s2651_s14 = sadd.s32 4294967295, %s2542_s28   ;;  %p1882_p0 = scmp.ge.s32.totalorder %s2542_s28, 1 }
   0xf   : > { %p3018_p1 = scmp.eq.s32.totalorder %s2651_s14, 0  ;;  %p340_p2 = scmp.lt.s32.totalorder %s2542_s28, 3 }
  0x10   : > { %s2545_s17 = smov [#allocation8]   ;;  %s2546_s19 = smov [#allocation7]  }
  0x11   : > { %p2656_p3 = pnand %p1882_p0, %p340_p2  ;;  %s390_s18 = sshll.u32 %s2545_s17, 4  ;;  %s2669_s18 = int_to_ptr.vmem [resolvable:$true] %s390_s18 }
  0x12   : > { %s2671_s20 = sshll.u32 %s2546_s19, 4  ;;  %s2349_s21 = scalar_lea.vmem %s353_s30, 3072  ;;  %s369_s20 = int_to_ptr.vmem [resolvable:$true] %s2671_s20 }
  0x13   : > { %s3031_s15 = scalar_select %p2656_p3, 1, 0 }
  0x14   : > { %p2183_p5 = pneg %p2656_p3  ;;  %p2350_p8 = scmp.ne.s32.totalorder %s353_s30, %s2349_s21 }
  0x15   : > { %p2357_p11 = scmp.lt.s32.totalorder %s353_s30, %s353_s30  ;;  %p2358_p12 = scmp.lt.s32.totalorder %s2349_s21, %s2349_s21 }
  0x16   : > { %p2665_p6 = pnand %p2183_p5, %p3018_p1 }
  0x17   : > { %p2359_p13 = por %p2358_p12, %p2357_p11 }
  0x18   : > { %p2340_p7 = pneg %p2665_p6 }
  0x1a   : > { %p2352_p9 = pnand %p2350_p8, %p2340_p7 }
  0x1c   : > { %p2353_p10 = pneg %p2352_p9 }
  0x1e   : > { %p2360_p0 = pnand %p2359_p13, %p2353_p10 }
  0x20   : > { %2363 = shalt.err (!%p2360_p0)
}
  0x21   : > { %s2547_s22 = smov 192   ;;  %s2548_s23 = smov 12  }
  0x22   : > { %s3033_s1 = sld [smem:[#allocation20_spill]]  ;;  %s2375_s17 = scalar_lea.vmem %s2669_s18, 1024 }
  0x23   : > { %p2376_p2 = scmp.ne.s32.totalorder %s2669_s18, %s2375_s17  ;;  %p2383_p9 = scmp.lt.s32.totalorder %s2669_s18, %s2669_s18 }
  0x24   : > { %p2384_p10 = scmp.lt.s32.totalorder %s2375_s17, %s2375_s17 }
  0x25   : > { %p2378_p5 = pnand %p2376_p2, %p2340_p7 }
  0x26   : > { %p2385_p11 = por %p2384_p10, %p2383_p9 }
  0x27   : > { %p2379_p8 = pneg %p2378_p5 }
  0x28   : > { %2186 = dma.hbm_to_vmem [thread:$0]  (!%p2665_p6), %s3033_s1, 3072, %s353_s30, [#allocation6], %s2547_s22, %s2547_s22, %s2548_s23  }
  0x29   : > { %p2386_p12 = pnand %p2385_p11, %p2379_p8 }
  0x2b   : > { %2389 = shalt.err (!%p2386_p12)
}
  0x2c   : > { %s2549_s19 = smov 64   ;;  %s2550_s21 = smov 4  }
  0x2d   : > { %s3034_s7 = sld [smem:[#allocation22_spill]]  ;;  %s2401_s23 = scalar_lea.vmem %s369_s20, 1024 }
  0x2e   : > { %p2402_p13 = scmp.ne.s32.totalorder %s369_s20, %s2401_s23  ;;  %p2409_p5 = scmp.lt.s32.totalorder %s369_s20, %s369_s20 }
  0x2f   : > { %p2410_p8 = scmp.lt.s32.totalorder %s2401_s23, %s2401_s23 }
  0x30   : > { %p2404_p0 = pnand %p2402_p13, %p2340_p7 }
  0x31   : > { %p2411_p9 = por %p2410_p8, %p2409_p5 }
  0x32   : > { %p2405_p2 = pneg %p2404_p0 }
  0x33   : > { %2192 = dma.hbm_to_vmem [thread:$0]  (!%p2665_p6), %s3034_s7, 1024, %s2669_s18, [#allocation9], %s2549_s19, %s2549_s19, %s2550_s21  }
  0x34   : > { %p2412_p10 = pnand %p2411_p9, %p2405_p2 }
  0x36   : > { %2415 = shalt.err (!%p2412_p10)
}
  0x37   : > { %s3035_s3 = sld [smem:[#allocation21_spill]]  ;;  %s2551_s18 = smov [#allocation10]  }
  0x38   : > { %s406_s17 = sshll.u32 %s2551_s18, 4  ;;  %s407_s17 = int_to_ptr.vmem [resolvable:$true] %s406_s17 }
  0x39   : > { %s2427_s30 = scalar_lea.vmem %s407_s17, 1024  ;;  %p2435_p0 = scmp.lt.s32.totalorder %s407_s17, %s407_s17 }
  0x3a   : > { %p2428_p11 = scmp.ne.s32.totalorder %s407_s17, %s2427_s30  ;;  %p2436_p5 = scmp.lt.s32.totalorder %s2427_s30, %s2427_s30 }
  0x3c   : > { %p2430_p12 = pnand %p2428_p11, %p2340_p7  ;;  %p2437_p2 = por %p2436_p5, %p2435_p0 }
  0x3d   : > { %2189 = dma.hbm_to_vmem [thread:$0]  (!%p2665_p6), %s3035_s3, 1024, %s369_s20, [#allocation6], %s2549_s19, %s2549_s19, %s2550_s21  }
  0x3e   : > { %p2431_p13 = pneg %p2430_p12 }
  0x40   : > { %p2438_p8 = pnand %p2437_p2, %p2431_p13 }
  0x42   : > { %2441 = shalt.err (!%p2438_p8)
}
  0x43   : > { %s3036_s9 = sld [smem:[#allocation23_spill]]  ;;  %s1881_s20 = sadd.s32 4294967294, %s2542_s28  }
  0x44   : > { %s2715_s16 = sadd.s32 1, %s2542_s28   ;;  %s38_s29 = sadd.s32 1, %s2538_s27 }
  0x45   : > { %3037 = sst [smem:[#allocation18_spill]] %s2715_s16  ;;  %s35_s24 = ssub.s32 %s2542_s28, %s2715_s16 }
  0x46   : > { %p36_p7 = scmp.eq.s32.totalorder %s35_s24, 0  ;;  %p45_p9 = scmp.ne.s32.totalorder %s2538_s27, %s2534_s26 }
  0x47   : > { %p46_p10 = scmp.eq.s32.totalorder %s2542_s28, 0  ;;  %p51_p11 = scmp.ne.s32.totalorder %s2534_s26, %s2530_s25 }
  0x48   : > { %s2726_s18 = scalar_select %p36_p7, %s2538_s27, %s38_s29  }
  0x49   : > { %2195 = dma.hbm_to_vmem [thread:$0]  (!%p2665_p6), %s3036_s9, 1024, %s407_s17, [#allocation9], %s2549_s19, %s2549_s19, %s2550_s21  }
  0x4a   : > { %3038 = sst [smem:[#allocation19_spill]] %s2726_s18  ;;  %p2728_p12 = por %p46_p10, %p45_p9 }
  0x4b   : > { %p2734_p6 = por %p3018_p1, %p51_p11  ;;  %p327_p13 = scmp.eq.s32.totalorder %s2651_s14, 1 }
  0x4c   : > { %p333_p0 = scmp.eq.s32.totalorder %s1881_s20, 1  ;;  %p2208_p5 = scmp.lt.s32.totalorder %s2542_s28, 2 }
  0x4d   : > { %s3040_s19 = scalar_select %p2734_p6, 1, 0 }
  0x4e   : > { %s429_s21 = sand.u32 1, %s2538_s27   ;;  %p2741_p2 = por %p327_p13, %p45_p9 }
  0x4f   : > { %p2745_p8 = por %p333_p0, %p51_p11  ;;  %s1888_s23 = sshll.u32 %s429_s21, 3 }
  0x50   : > { %s3041_s17 = scalar_select %p2741_p2, 1, 0 }
  0x51   : > { %s3042_s22 = scalar_select %p2745_p8, 1, 0 }
  0x52   : > { %s1889_s24 = sshll.u32 %s2542_s28, 7  ;;  %s433_s20 = scalar_lea.vmem [#allocation2], %s1888_s23 }
  0x53   : > { %s2753_s3 = scalar_lea.hbm %s3003_s0, %s1889_s24  ;;  %s440_s7 = sshll.u32 %s433_s20, 4  ;;  %s441_s7 = int_to_ptr.vmem [resolvable:$true] %s440_s7 }
  0x54   : > { %p2757_p7 = pnand %p2208_p5, %p2728_p12  ;;  %s430_s18 = scalar_lea.sflag [#allocation3], %s429_s21 }
  0x55   : > { %s2442_s27 = scalar_lea.hbm %s2753_s3, 128  ;;  %s2447_s29 = scalar_lea.hbm %s3003_s0, 256 }
  0x56   : > { %p2443_p9 = scmp.ne.s32.totalorder %s2753_s3, %s2442_s27  ;;  %p2444_p10 = pneg %p2757_p7 }
  0x57   : > { %p2448_p0 = scmp.lt.s32.totalorder %s2753_s3, %s3003_s0  ;;  %p2449_p12 = scmp.lt.s32.totalorder %s2447_s29, %s2442_s27 }
  0x58   : > { %p2445_p11 = pnand %p2444_p10, %p2443_p9 }
  0x59   : > { %p2450_p5 = por %p2449_p12, %p2448_p0 }
  0x5a   : > { %p2446_p13 = pneg %p2445_p11 }
  0x5c   : > { %p2451_p4 = pnand %p2450_p5, %p2446_p13 }
  0x5e   : > { %2454 = shalt.err (!%p2451_p4)
}
  0x5f   : > { %s2455_s30 = scalar_lea.vmem %s441_s7, 128  ;;  %s2552_s21 = smov [#allocation2]  }
  0x60   : > { %p2456_p1 = scmp.ne.s32.totalorder %s441_s7, %s2455_s30  ;;  %s2460_s16 = sshll.u32 %s2552_s21, 4  ;;  %s2461_s16 = int_to_ptr.vmem [resolvable:$false] %s2460_s16 }
  0x61   : > { %s2462_s28 = scalar_lea.vmem %s2461_s16, 256  ;;  %p2463_p9 = scmp.lt.s32.totalorder %s441_s7, %s2461_s16 }
  0x62   : > { %p2458_p8 = pnand %p2456_p1, %p2444_p10  ;;  %p2464_p11 = scmp.lt.s32.totalorder %s2462_s28, %s2455_s30 }
  0x64   : > { %p2459_p2 = pneg %p2458_p8  ;;  %p2465_p6 = por %p2464_p11, %p2463_p9 }
  0x66   : > { %p2466_p3 = pnand %p2465_p6, %p2459_p2 }
  0x68   : > { %2469 = shalt.err (!%p2466_p3)
}
  0x69   : > { %2199 = dma.hbm_to_vmem [thread:$0]  (!%p2757_p7), %s2753_s3, 128, %s441_s7, %s430_s18  }
  0x6a   : > { %p3044_p13 = scmp.ne.s32.totalorder %s3031_s15, 0 }
  0x6b   : > { %s2778_s27 = sand.u32 (!%p3044_p13), 1, %s2534_s26   ;;  %p3045_p1 = scmp.ne.s32.totalorder (!%p3044_p13), %s3040_s19, 0 }
  0x6c   : > { %449 = sbr.rel (%p3044_p13) target bundleno = 3648 (0xe40), region = 72  ;;  %s1891_s1 = sshll.u32 (!%p3044_p13), %s2778_s27, 3 }
  0x6d   : > { %s452_s16 = scalar_lea.sflag (!%p3044_p13), [#allocation3], %s2778_s27  ;;  %s2784_s28 = scalar_lea.vmem (!%p3044_p13), [#allocation2], %s1891_s1 }
  0x71   : > { %2513 = dma.done.wait (%p3045_p1), %s452_s16, 128  }
  0x72   : > { %2515 = vsyncadd (%p3045_p1), %s452_s16, 4294967168  ;;  %p3046_p3 = scmp.eq.s32.totalorder %s2651_s14, 0 }
  0x74   : > { %2517 = dma.done.wait (%p3046_p3), [#allocation6], 4096   ;;  %p3047_p4 = pmov %p3046_p3 }
  0x75   : > { %p3048_p6 = pmov %p3046_p3 }
  0x76   : > { %2519 = vsyncadd (%p3047_p4), [#allocation6], 4294963200 }
  0x77   : > { %2521 = dma.done.wait (%p3048_p6), [#allocation9], 2048   ;;  %p3049_p2 = pmov %p3046_p3 }
  0x78   : > { %v2553_v0 = vmov 0   ;;  %v2260_v1 = vld [vmem:[#allocation5 + $0xac] ss:$12 sps:$4 sm:$0xff]   ;;  %v2262_v2 = vld [vmem:[#allocation5 + $0xa8] ss:$12 sps:$4 sm:$0xff]   ;;  %v2554_v19 = vmov 0.0   ;;  %v551_v20 = vlaneseq }
  0x79   : > { %2523 = vsyncadd (%p3049_p2), [#allocation9], 4294965248  ;;  %726 = vmatprep.mubr.bf16.mxu0 %v2553_v0  ;;  %694 = vmatprep.subr.bf16.mxu0 %v2260_v1  ;;  %v2263_v3 = vld [vmem:[#allocation5 + $0x94] ss:$12 sps:$4 sm:$0xff]   ;;  %v2265_v4 = vld [vmem:[#allocation5 + $0x90] ss:$12 sps:$4 sm:$0xff]  }
  0x7a   : > { %695 = vmatpush1.bf16.msra.mxu0 %v2262_v2  ;;  %v2266_v5 = vld [vmem:[#allocation5 + $0x7c] ss:$12 sps:$4 sm:$0xff]   ;;  %v2268_v6 = vld [vmem:[#allocation5 + $0x78] ss:$12 sps:$4 sm:$0xff]   ;;  %v2271_v8 = vld [vmem:[#allocation5 + $0x60] ss:$12 sps:$4 sm:$0xff]   ;;  %2023 = vmatprep.subr.bf16.mxu1 %v2554_v19 }
  0x7b   : > { %696 = vmatprep.subr.bf16.mxu0 %v2263_v3  ;;  %v2269_v7 = vld [vmem:[#allocation5 + $0x64] ss:$12 sps:$4 sm:$0xff]   ;;  %v2272_v9 = vld [vmem:[#allocation5 + $0x4c] ss:$12 sps:$4 sm:$0xff]   ;;  %v2274_v10 = vld [vmem:[#allocation5 + $0x48] ss:$12 sps:$4 sm:$0xff]  }
  0x7c   : > { %v2275_v11 = vld [vmem:[#allocation5 + $0x34] ss:$12 sps:$4 sm:$0xff]   ;;  %v2277_v12 = vld [vmem:[#allocation5 + $0x30] ss:$12 sps:$4 sm:$0xff]   ;;  %v2280_v14 = vld [vmem:[#allocation5 + $0x18] ss:$12 sps:$4 sm:$0xff]  }
  0x7d   : > { %v2278_v13 = vld [vmem:[#allocation5 + $0x1c] ss:$12 sps:$4 sm:$0xff]   ;;  %v2281_v15 = vld [vmem:[#allocation5 + $0x4] ss:$12 sps:$4 sm:$0xff]   ;;  %v2283_v16 = vld [vmem:[#allocation5] ss:$12 sps:$4 sm:$0xff]  }
  0x7e   : > { %697 = vmatpush1.bf16.msra.mxu0 %v2265_v4  ;;  %v2799_v17 = vld [vmem:[%s2784_s28] sm:$0xff]  ;;  %vm2555_vm0 = vmmov 0   ;;  %v2809_v21 = vshrl.u32 %v551_v20, 7  ;;  %vm778_vm1 = vcmask 261120   ;;  %s2556_s9 = smov 96   ;;  %vm826_vm2 = vcmask 64512  }
  0x7f   : > { %698 = vmatprep.subr.bf16.mxu0 %v2266_v5  ;;  %v516_v18 = vpack.c.bf16 %v2799_v17, %v2799_v17  ;;  %2039 = vmatprep.mubr.msk.bf16.mxu1 %vm2555_vm0, %v2554_v19  ;;  %v2816_v24 = vld [vmem:[%s3005_s2] sm:$0x7]  ;;  %v2285_v37 = vld [vmem:[#allocation5 + $0x98] ss:$12 sps:$4 sm:$0xff]   ;;  %v2286_v38 = vld [vmem:[#allocation5 + $0x80] ss:$12 sps:$4 sm:$0xff]  }
  0x80   : > { %v557_v22 = vsub.s32 1, %v2809_v21  ;;  %v553_v23 = vsub.s32 0, %v2809_v21  ;;  %v2284_v36 = vld [vmem:[#allocation5 + $0xb0] ss:$12 sps:$4 sm:$0xff]   ;;  %v2287_v39 = vld [vmem:[#allocation5 + $0x68] ss:$12 sps:$4 sm:$0xff]  }
  0x81   : > { %2024 = vmatpush3.bf16.msra.mxu1 %v2284_v36  ;;  %v2288_v40 = vld [vmem:[#allocation5 + $0x50] ss:$12 sps:$4 sm:$0xff]   ;;  %v2289_v41 = vld [vmem:[#allocation5 + $0x38] ss:$12 sps:$4 sm:$0xff]   ;;  %v2290_v42 = vld [vmem:[#allocation5 + $0x20] ss:$12 sps:$4 sm:$0xff]  }
  0x82   : > { %699 = vmatpush1.bf16.msra.mxu0 %v2268_v6  ;;  %v558_v25 = vrot.slane %v2816_v24, %v557_v22  ;;  %v554_v27 = vrot.slane %v2816_v24, %v553_v23  ;;  %2025 = vmatprep.subr.bf16.mxu1 %v2554_v19  ;;  %v2291_v43 = vld [vmem:[#allocation5 + $0x8] ss:$12 sps:$4 sm:$0xff]   ;;  %v561_v4 = vsub.s32 2, %v2809_v21  ;;  %vm842_vm3 = vcmask 1043456   ;;  %s2557_s15 = smov 64   ;;  %v2294_v20 = vld [vmem:[#allocation7 + $0x18] sm:$0xff]  }
  0x83   : > { %700 = vmatprep.subr.bf16.mxu0 %v2269_v7  ;;  %v2295_v21 = vld [vmem:[#allocation7 + $0x10] sm:$0xff]   ;;  %s2558_s18 = smov 32   ;;  %s1965_s19 = sshll.u32 %s2651_s14, 7 }
  0x84   : > { %v562_v5 = vrot.slane %v2816_v24, %v561_v4  ;;  %s513_s24 = scalar_lea.vmem [#allocation11], %s1891_s1  ;;  %s1771_s30 = scalar_lea.hbm %s3016_s13, %s1965_s19 }
  0x85   : > { %2026 = vmatpush3.bf16.msra.mxu1 %v2285_v37  ;;  %s1773_s29 = sshll.u32 %s513_s24, 4  ;;  %s1760_s21 = scalar_lea.sflag [#allocation4], %s2778_s27  ;;  %s1774_s29 = int_to_ptr.vmem [resolvable:$true] %s1773_s29 }
  0x86   : > { %701 = vmatpush1.bf16.msra.mxu0 %v2271_v8  ;;  %2027 = vmatprep.subr.bf16.mxu1 %v2554_v19  ;;  %s2470_s16 = scalar_lea.vmem %s1774_s29, 128  ;;  %p3050_p7 = scmp.ne.s32.totalorder %s3041_s17, 0 }
  0x87   : > { %702 = vmatprep.subr.bf16.mxu0 %v2272_v9  ;;  %p2471_p8 = scmp.ne.s32.totalorder %s1774_s29, %s2470_s16  ;;  %s2559_s28 = smov [#allocation11]  }
  0x88   : > { %s2474_s3 = sshll.u32 %s2559_s28, 4  ;;  %s2475_s3 = int_to_ptr.vmem [resolvable:$false] %s2474_s3 }
  0x89   : > { %2028 = vmatpush3.bf16.msra.mxu1 %v2286_v38  ;;  %p2472_p10 = pnand %p2471_p8, %p3050_p7  ;;  %s2476_s14 = scalar_lea.vmem %s2475_s3, 256 }
  0x8a   : > { %703 = vmatpush1.bf16.msra.mxu0 %v2274_v10  ;;  %2029 = vmatprep.subr.bf16.mxu1 %v2554_v19  ;;  %p2477_p12 = scmp.lt.s32.totalorder %s1774_s29, %s2475_s3  ;;  %p2478_p5 = scmp.lt.s32.totalorder %s2476_s14, %s2470_s16 }
  0x8b   : > { %704 = vmatprep.subr.bf16.mxu0 %v2275_v11  ;;  %p2473_p0 = pneg %p2472_p10 }
  0x8c   : > { %p2479_p9 = por %p2478_p5, %p2477_p12 }
  0x8d   : > { %2030 = vmatpush3.bf16.msra.mxu1 %v2287_v39 }
  0x8e   : > { %705 = vmatpush1.bf16.msra.mxu0 %v2277_v12  ;;  %2031 = vmatprep.subr.bf16.mxu1 %v2554_v19  ;;  %p2480_p11 = pnand %p2479_p9, %p2473_p0 }
  0x8f   : > { %706 = vmatprep.subr.bf16.mxu0 %v2278_v13 }
  0x91   : > { %2032 = vmatpush3.bf16.msra.mxu1 %v2288_v40 }
  0x92   : > { %707 = vmatpush1.bf16.msra.mxu0 %v2280_v14  ;;  %2033 = vmatprep.subr.bf16.mxu1 %v2554_v19 }
  0x93   : > { %708 = vmatprep.subr.bf16.mxu0 %v2281_v15 }
  0x95   : > { %2034 = vmatpush3.bf16.msra.mxu1 %v2289_v41 }
  0x96   : > { %709 = vmatpush1.bf16.msra.mxu0 %v2283_v16  ;;  %2035 = vmatprep.subr.bf16.mxu1 %v2554_v19 }
  0x97   : > { %2043 = vmatprep.subr.bf16.mxu0 %v2554_v19 }
  0x99   : > { %727 = vmatmul.mubr.bf16.vlgmr.msra.gmra.mxu0 %v516_v18  ;;  %2036 = vmatpush3.bf16.msra.mxu1 %v2290_v42 }
  0x9a   : > { %2045 = vmatprep.mubr.msk.bf16.mxu0 %vm2555_vm0, %v2554_v19  ;;  %2037 = vmatprep.subr.bf16.mxu1 %v2554_v19 }
  0x9d   : > { %2038 = vmatpush3.bf16.msra.mxu1 %v2291_v43 }
  0x9e   : > { %2049 = vmatprep.subr.bf16.mxu1 %v2554_v19 }
  0xa0   : > { %2040 = vmatmul.mubr.bf16.vlgmr.msra.gmra.mxu1 %v516_v18 }
  0xa1   : > { %2051 = vmatprep.mubr.msk.bf16.mxu1 %vm2555_vm0, %v2554_v19 }
 0x159   : > { %v728_v26 = vpop.f32.mrf.mxu0 }
 0x15a   : > { %v729_v31 = vadd.f32 %v728_v26, %v554_v27  ;;  %v2292_v27 = vld [vmem:[#allocation7 + $0x8] sm:$0xff]  }
 0x15b   : > { %v730_v28 = vpop.f32.mrf.mxu0 }
 0x15c   : > { %v731_v29 = vadd.f32 %v730_v28, %v558_v25  ;;  %v2826_v35 = vpack.c.bf16 %v729_v31, %v729_v31 }
 0x15d   : > { %v732_v30 = vpop.f32.mrf.mxu0 }
 0x15e   : > { %v2820_v32 = vpack.c.bf16 %v731_v29, %v731_v29  ;;  %v2293_v29 = vld [vmem:[#allocation7] sm:$0xff]  }
 0x15f   : > { %v733_v33 = vpop.f32.mrf.mxu0 }
 0x160   : > { %895 = vrot.lane.b32.xlu0 %v2820_v32, %s2556_s9  ;;  %v783_v34 = vsel %vm778_vm1, %v2820_v32, 0  ;;  %v769_v62 = vpop.f32.mrf.mxu1 }
 0x161   : > { %2044 = vmatpush3.bf16.xpose.msra.mxu0 %v783_v34  ;;  %v770_v6 = vadd.f32 %v769_v62, %v562_v5 }
 0x162   : > { %2055 = vmatprep.subr.bf16.mxu0 %v2554_v19  ;;  %v2041_v63 = vpop.f32.mrf.mxu1 }
 0x163   : > { %v2855_v7 = vpack.c.bf16 %v770_v6, %v770_v6 }
 0x164   : > { %892 = vrot.lane.b32.xlu0 %v2826_v35, %s2556_s9  ;;  %v772_v0 = vpop.f32.mrf.mxu1 }
 0x165   : > { %v844_v8 = vsel %vm842_vm3, %v2855_v7, 0 }
 0x166   : > { %v2042_v1 = vpop.f32.mrf.mxu1  ;;  %2050 = vmatpush3.bf16.msra.mxu1 %v844_v8 }
 0x167   : > { %2061 = vmatprep.subr.bf16.mxu1 %v2554_v19 }
 0x168   : > { %2046 = vmatmul.mubr.msk.bf16.vlgmr.msra.gmra.mxu0 %vm778_vm1, %v2826_v35 }
 0x169   : > { %2057 = vmatprep.mubr.msk.bf16.mxu0 %vm2555_vm0, %v2554_v19 }
 0x1d2   : > { %v896_v44 = vpop.permute.xlu0 %895 }
 0x1d3   : > { %v901_v45 = vsel %vm778_vm1, %v896_v44, 0 }
 0x1d4   : > { %2056 = vmatpush3.bf16.xpose.msra.mxu0 %v901_v45 }
 0x1d5   : > { %2067 = vmatprep.subr.bf16.mxu0 %v2554_v19 }
 0x1d6   : > { %v893_v46 = vpop.permute.xlu0 %892 }
 0x1db   : > { %2058 = vmatmul.mubr.msk.bf16.vlgmr.msra.gmra.mxu0 %vm778_vm1, %v893_v46 }
 0x1dc   : > { %2071 = vmatprep.mubr.msk.bf16.mxu0 %vm2555_vm0, %v2554_v19  ;;  %2068 = vmatpush3.bf16.msra.mxu0 %v2294_v20 }
 0x1dd   : > { %2069 = vmatprep.subr.bf16.mxu0 %v2554_v19 }
 0x1e0   : > { %2070 = vmatpush3.bf16.msra.mxu0 %v2295_v21 }
 0x1e1   : > { %2083 = vmatprep.subr.bf16.mxu0 %v2554_v19 }
 0x228   : > { %v819_v47 = vpop.f32.mrf.mxu0 }
 0x229   : > { %v825_v48 = vmul.f32 0.17677669, %v819_v47 }
 0x22a   : > { %v2047_v49 = vpop.f32.mrf.mxu0 }
 0x22b   : > { %v827_v50 = vsel %vm826_vm2, %v825_v48, -inf }
 0x22c   : > { %828 = vmax.xlane.f32.xlu1 %v827_v50  ;;  %v822_v51 = vpop.f32.mrf.mxu0 }
 0x22e   : > { %v2048_v52 = vpop.f32.mrf.mxu0 }
 0x29b   : > { %v937_v53 = vpop.f32.mrf.mxu0 }
 0x29c   : > { %v943_v54 = vmul.f32 0.17677669, %v937_v53 }
 0x29d   : > { %v2059_v55 = vpop.f32.mrf.mxu0 }
 0x29e   : > { %v944_v56 = vsel %vm826_vm2, %v943_v54, -inf }
 0x29f   : > { %945 = vmax.xlane.f32.xlu1 %v944_v56  ;;  %v940_v57 = vpop.f32.mrf.mxu0 }
 0x2a1   : > { %v2060_v58 = vpop.f32.mrf.mxu0 }
 0x2b5   : > { %v829_v59 = vpop.xlane.xlu1 %828 }
 0x2b6   : > { %v830_v60 = vsub.f32 %v825_v48, %v829_v59 }
 0x2b8   : > { %v831_v61 = vmul.f32 1.442695, %v830_v60 }
 0x2ba   : > { %2316 = vpow2.f32 %v831_v61 }
 0x2c7   : > { %v2317_v2 = vpop.eup %2316 }
 0x2c8   : > { %v833_v3 = vsel %vm826_vm2, %v2317_v2, 0.0 }
 0x2c9   : > { %834 = vadd.xlane.f32.xlu0 %v833_v3 }
 0x2df   : > { %1183 = vrot.lane.b32.xlu0 %v2855_v7, %s2557_s15 }
 0x328   : > { %v946_v9 = vpop.xlane.xlu1 %945 }
 0x329   : > { %v947_v10 = vsub.f32 %v943_v54, %v946_v9 }
 0x32b   : > { %v948_v11 = vmul.f32 1.442695, %v947_v10 }
 0x32d   : > { %2318 = vpow2.f32 %v948_v11 }
 0x33a   : > { %v2319_v12 = vpop.eup %2318 }
 0x33b   : > { %v950_v13 = vsel %vm826_vm2, %v2319_v12, 0.0 }
 0x33c   : > { %951 = vadd.xlane.f32.xlu1 %v950_v13 }
 0x34d   : > { %957 = vrot.lane.b32.xlu1 %v2855_v7, %s2556_s9 }
 0x351   : > { %1122 = vrot.lane.b32.xlu1 %v2820_v32, %s2557_s15 }
 0x352   : > { %v835_v14 = vpop.xlane.xlu0 %834 }
 0x353   : > { %2320 = vrcp.f32 %v835_v14 }
 0x355   : > { %1120 = vrot.lane.b32.xlu1 %v2826_v35, %s2557_s15 }
 0x356   : > { %v1184_v30 = vpop.permute.xlu0 %1183 }
 0x357   : > { %v1189_v36 = vsel %vm842_vm3, %v1184_v30, 0 }
 0x360   : > { %v2321_v15 = vpop.eup %2320 }
 0x361   : > { %v837_v16 = vmul.f32 %v2321_v15, %v2317_v2  ;;  %v2296_v2 = vld [vmem:[#allocation7 + $0x28] sm:$0xff]  }
 0x363   : > { %v838_v18 = vpack.c.bf16 %v837_v16, %v837_v16 }
 0x365   : > { %2052 = vmatmul.mubr.msk.bf16.vlgmr.msra.gmra.mxu1 %vm826_vm2, %v838_v18 }
 0x366   : > { %2063 = vmatprep.mubr.msk.bf16.mxu1 %vm2555_vm0, %v2554_v19 }
 0x3c5   : > { %v952_v22 = vpop.xlane.xlu1 %951 }
 0x3c6   : > { %2322 = vrcp.f32 %v952_v22 }
 0x3c9   : > { %v958_v23 = vpop.permute.xlu1 %957 }
 0x3ca   : > { %v963_v24 = vsel %vm842_vm3, %v958_v23, 0 }
 0x3cb   : > { %2062 = vmatpush3.bf16.msra.mxu1 %v963_v24 }
 0x3cc   : > { %2075 = vmatprep.subr.bf16.mxu1 %v2554_v19 }
 0x3cd   : > { %v1123_v39 = vpop.permute.xlu1 %1122 }
 0x3ce   : > { %v1128_v43 = vsel %vm778_vm1, %v1123_v39, 0 }
 0x3d1   : > { %v1121_v46 = vpop.permute.xlu1 %1120 }
 0x3d3   : > { %v2323_v25 = vpop.eup %2322 }
 0x3d4   : > { %v954_v26 = vmul.f32 %v2323_v25, %v2319_v12 }
 0x3d6   : > { %v955_v28 = vpack.c.bf16 %v954_v26, %v954_v26 }
 0x3d8   : > { %2064 = vmatmul.mubr.msk.bf16.vlgmr.msra.gmra.mxu1 %vm826_vm2, %v955_v28 }
 0x3d9   : > { %2076 = vmatpush3.bf16.msra.mxu1 %v2292_v27  ;;  %2079 = vmatprep.mubr.msk.bf16.mxu1 %vm2555_vm0, %v2554_v19 }
 0x3da   : > { %2077 = vmatprep.subr.bf16.mxu1 %v2554_v19 }
 0x3dd   : > { %2078 = vmatpush3.bf16.msra.mxu1 %v2293_v29 }
 0x3de   : > { %2089 = vmatprep.subr.bf16.mxu1 %v2554_v19 }
 0x425   : > { %v880_v31 = vpop.f32.mrf.mxu1 }
 0x426   : > { %v886_v33 = vpack.c.bf16 %v880_v31, %v880_v31 }
 0x427   : > { %v2053_v34 = vpop.f32.mrf.mxu1 }
 0x428   : > { %2080 = vmatmul.mubr.msk.bf16.vlgmr.msra.gmra.mxu1 %vm778_vm1, %v886_v33  ;;  %v2298_v33 = vld [vmem:[#allocation7 + $0x38] sm:$0xff]  }
 0x429   : > { %2090 = vmatpush3.bf16.msra.mxu1 %v1189_v36  ;;  %v883_v37 = vpop.f32.mrf.mxu1  ;;  %2091 = vmatprep.mubr.msk.bf16.mxu1 %vm2555_vm0, %v2554_v19 }
 0x42a   : > { %2103 = vmatprep.subr.bf16.mxu1 %v2554_v19 }
 0x42b   : > { %v2054_v38 = vpop.f32.mrf.mxu1 }
 0x498   : > { %v999_v40 = vpop.f32.mrf.mxu1 }
 0x499   : > { %v1005_v41 = vpack.c.bf16 %v999_v40, %v999_v40 }
 0x49a   : > { %v2065_v42 = vpop.f32.mrf.mxu1 }
 0x49b   : > { %2072 = vmatmul.mubr.msk.bf16.vlgmr.msra.gmra.mxu0 %vm778_vm1, %v1005_v41  ;;  %v2299_v42 = vld [vmem:[#allocation7 + $0x30] sm:$0xff]  }
 0x49c   : > { %2084 = vmatpush3.bf16.xpose.msra.mxu0 %v1128_v43  ;;  %v1002_v44 = vpop.f32.mrf.mxu1  ;;  %2085 = vmatprep.mubr.msk.bf16.mxu0 %vm2555_vm0, %v2554_v19 }
 0x49d   : > { %2095 = vmatprep.subr.bf16.mxu0 %v2554_v19 }
 0x49e   : > { %v2066_v45 = vpop.f32.mrf.mxu1 }
 0x4a3   : > { %2086 = vmatmul.mubr.msk.bf16.vlgmr.msra.gmra.mxu0 %vm778_vm1, %v1121_v46 }
 0x4a4   : > { %2099 = vmatprep.mubr.msk.bf16.mxu0 %vm2555_vm0, %v2554_v19  ;;  %2096 = vmatpush3.bf16.msra.mxu0 %v2296_v2  ;;  %v2307_v2 = vld [vmem:[#allocation8] sm:$0xff]  }
 0x4a5   : > { %2097 = vmatprep.subr.bf16.mxu0 %v2554_v19 }
 0x4e8   : > { %v2891_v47 = vpop.f32.mrf.mxu1 }
 0x4ea   : > { %v2081_v48 = vpop.f32.mrf.mxu1 }
 0x4ec   : > { %v1117_v49 = vpop.f32.mrf.mxu1 }
 0x4ed   : > { %v1941_v49 = vld [vmem:[%s3007_s4] ss:$0 sm:$0xff] }
 0x4ee   : > { %v2082_v50 = vpop.f32.mrf.mxu1 }
 0x55b   : > { %v2893_v51 = vpop.f32.mrf.mxu0 }
 0x55c   : > { %v1115_v28 = vadd.f32 %v2891_v47, %v2893_v51 }
 0x55d   : > { %v2073_v52 = vpop.f32.mrf.mxu0 }
 0x55f   : > { %v1062_v53 = vpop.f32.mrf.mxu0 }
 0x561   : > { %v2074_v54 = vpop.f32.mrf.mxu0 }
 0x563   : > { %v1164_v55 = vpop.f32.mrf.mxu0 }
 0x564   : > { %v1170_v56 = vmul.f32 0.17677669, %v1164_v55 }
 0x565   : > { %v2087_v57 = vpop.f32.mrf.mxu0 }
 0x566   : > { %v1171_v58 = vsel %vm826_vm2, %v1170_v56, -inf  ;;  %v2301_v57 = vld [vmem:[#allocation8 + $0x30] sm:$0xff]  }
 0x567   : > { %1172 = vmax.xlane.f32.xlu1 %v1171_v58  ;;  %v1167_v59 = vpop.f32.mrf.mxu0 }
 0x569   : > { %v2088_v60 = vpop.f32.mrf.mxu0 }
 0x5f0   : > { %v1173_v61 = vpop.xlane.xlu1 %1172 }
 0x5f1   : > { %v1174_v62 = vsub.f32 %v1170_v56, %v1173_v61  ;;  %v2300_v56 = vld [vmem:[#allocation8 + $0x38] sm:$0xff]  }
 0x5f3   : > { %v1175_v63 = vmul.f32 1.442695, %v1174_v62  ;;  %v2302_v62 = vld [vmem:[#allocation8 + $0x28] sm:$0xff]  }
 0x5f5   : > { %2324 = vpow2.f32 %v1175_v63  ;;  %v2303_v63 = vld [vmem:[#allocation8 + $0x20] sm:$0xff]  }
 0x602   : > { %v2325_v0 = vpop.eup %2324 }
 0x603   : > { %v1177_v1 = vsel %vm826_vm2, %v2325_v0, 0.0 }
 0x604   : > { %1178 = vadd.xlane.f32.xlu0 %v1177_v1  ;;  %v2306_v1 = vld [vmem:[#allocation8 + $0x8] sm:$0xff]  }
 0x61a   : > { %1294 = vrot.lane.b32.xlu0 %v2820_v32, %s2558_s18 }
 0x61e   : > { %1292 = vrot.lane.b32.xlu0 %v2826_v35, %s2558_s18  ;;  %v2297_v35 = vld [vmem:[#allocation7 + $0x20] sm:$0xff]  }
 0x61f   : > { %2098 = vmatpush3.bf16.msra.mxu0 %v2297_v35 }
 0x620   : > { %2109 = vmatprep.subr.bf16.mxu0 %v2554_v19 }
 0x68d   : > { %v1179_v3 = vpop.xlane.xlu0 %1178 }
 0x68e   : > { %2326 = vrcp.f32 %v1179_v3  ;;  %v2308_v3 = vld [vmem:[#allocation10 + $0x38] sm:$0xff]  }
 0x691   : > { %v1295_v6 = vpop.permute.xlu0 %1294 }
 0x692   : > { %v1300_v9 = vsel %vm778_vm1, %v1295_v6, 0 }
 0x695   : > { %v1293_v32 = vpop.permute.xlu0 %1292 }
 0x69b   : > { %v2327_v4 = vpop.eup %2326 }
 0x69c   : > { %v1181_v5 = vmul.f32 %v2327_v4, %v2325_v0  ;;  %v2305_v0 = vld [vmem:[#allocation8 + $0x10] sm:$0xff]  }
 0x69d   : > { %v2309_v4 = vld [vmem:[#allocation10 + $0x30] sm:$0xff]  }
 0x69e   : > { %v1182_v8 = vpack.c.bf16 %v1181_v5, %v1181_v5 }
 0x6a0   : > { %2092 = vmatmul.mubr.msk.bf16.vlgmr.msra.gmra.mxu1 %vm826_vm2, %v1182_v8 }
 0x6a1   : > { %2104 = vmatpush3.bf16.xpose.msra.mxu1 %v1300_v9  ;;  %2105 = vmatprep.mubr.msk.bf16.mxu1 %vm2555_vm0, %v2554_v19 }
 0x6a2   : > { %2115 = vmatprep.subr.bf16.mxu1 %v2554_v19 }
 0x6a8   : > { %2106 = vmatmul.mubr.msk.bf16.vlgmr.msra.gmra.mxu1 %vm778_vm1, %v1293_v32  ;;  %v1942_v32 = vld [vmem:[%s3008_s5] ss:$0 sm:$0xff] }
 0x6a9   : > { %2119 = vmatprep.mubr.msk.bf16.mxu1 %vm2555_vm0, %v2554_v19  ;;  %2116 = vmatpush3.bf16.msra.mxu1 %v2298_v33 }
 0x6aa   : > { %2117 = vmatprep.subr.bf16.mxu1 %v2554_v19 }
 0x6ad   : > { %2118 = vmatpush3.bf16.msra.mxu1 %v2299_v42 }
 0x6ae   : > { %2143 = vmatprep.subr.bf16.mxu1 %v2554_v19 }
 0x760   : > { %v1225_v10 = vpop.f32.mrf.mxu1 }
 0x761   : > { %v1231_v11 = vpack.c.bf16 %v1225_v10, %v1225_v10  ;;  %v1943_v10 = vld [vmem:[%s3009_s6] ss:$0 sm:$0xff] }
 0x762   : > { %v2093_v12 = vpop.f32.mrf.mxu1 }
 0x763   : > { %2100 = vmatmul.mubr.msk.bf16.vlgmr.msra.gmra.mxu0 %vm778_vm1, %v1231_v11 }
 0x764   : > { %v1228_v13 = vpop.f32.mrf.mxu1  ;;  %2111 = vmatprep.mubr.msk.bf16.mxu0 %vm2555_vm0, %v2554_v19 }
 0x766   : > { %v2094_v14 = vpop.f32.mrf.mxu1 }
 0x767   : > { %v2310_v14 = vld [vmem:[#allocation10 + $0x28] sm:$0xff]  }
 0x768   : > { %v1336_v15 = vpop.f32.mrf.mxu1 }
 0x769   : > { %v1342_v16 = vmul.f32 0.17677669, %v1336_v15  ;;  %v2311_v15 = vld [vmem:[#allocation10 + $0x20] sm:$0xff]  }
 0x76a   : > { %v2107_v18 = vpop.f32.mrf.mxu1 }
 0x76b   : > { %v1343_v20 = vsel %vm826_vm2, %v1342_v16, -inf  ;;  %v2313_v18 = vld [vmem:[#allocation10 + $0x10] sm:$0xff]  }
 0x76c   : > { %1344 = vmax.xlane.f32.xlu0 %v1343_v20  ;;  %v1339_v21 = vpop.f32.mrf.mxu1  ;;  %v2314_v20 = vld [vmem:[#allocation10 + $0x8] sm:$0xff]  }
 0x76d   : > { %v2315_v21 = vld [vmem:[#allocation10] sm:$0xff]  }
 0x76e   : > { %v2108_v22 = vpop.f32.mrf.mxu1 }
 0x76f   : > { %v1944_v22 = vld [vmem:[%s3011_s8] ss:$0 sm:$0xff] }
 0x7f5   : > { %v1345_v23 = vpop.xlane.xlu0 %1344 }
 0x7f6   : > { %v1346_v24 = vsub.f32 %v1342_v16, %v1345_v23  ;;  %v2312_v16 = vld [vmem:[#allocation10 + $0x18] sm:$0xff]  }
 0x7f8   : > { %v1347_v25 = vmul.f32 1.442695, %v1346_v24 }
 0x7fa   : > { %2328 = vpow2.f32 %v1347_v25 }
 0x807   : > { %v2329_v26 = vpop.eup %2328 }
 0x808   : > { %v1349_v27 = vsel %vm826_vm2, %v2329_v26, 0.0 }
 0x809   : > { %1350 = vadd.xlane.f32.xlu1 %v1349_v27 }
 0x81a   : > { %1355 = vrot.lane.b32.xlu1 %v2855_v7, %s2558_s18 }
 0x823   : > { %v1285_v29 = vpop.f32.mrf.mxu0 }
 0x824   : > { %v1291_v30 = vadd.f32 %v1285_v29, %v1115_v28 }
 0x825   : > { %v2101_v31 = vpop.f32.mrf.mxu0 }
 0x827   : > { %v1288_v34 = vpop.f32.mrf.mxu0 }
 0x829   : > { %v2102_v36 = vpop.f32.mrf.mxu0 }
 0x892   : > { %v1351_v37 = vpop.xlane.xlu1 %1350 }
 0x893   : > { %2330 = vrcp.f32 %v1351_v37 }
 0x896   : > { %v1356_v38 = vpop.permute.xlu1 %1355 }
 0x897   : > { %v1361_v39 = vsel %vm842_vm3, %v1356_v38, 0 }
 0x898   : > { %2110 = vmatpush3.bf16.msra.mxu0 %v1361_v39 }
 0x899   : > { %2123 = vmatprep.subr.bf16.mxu0 %v2554_v19 }
 0x8a0   : > { %v2331_v7 = vpop.eup %2330 }
 0x8a1   : > { %v1353_v40 = vmul.f32 %v2331_v7, %v2329_v26 }
 0x8a3   : > { %v1354_v41 = vpack.c.bf16 %v1353_v40, %v1353_v40 }
 0x8a5   : > { %2112 = vmatmul.mubr.msk.bf16.vlgmr.msra.gmra.mxu0 %vm826_vm2, %v1354_v41 }
 0x8a6   : > { %2139 = vmatprep.mubr.msk.bf16.mxu0 %vm2555_vm0, %v2554_v19  ;;  %2124 = vmatpush3.bf16.msra.mxu0 %v2300_v56 }
 0x8a7   : > { %2125 = vmatprep.subr.bf16.mxu0 %v2554_v19 }
 0x8aa   : > { %2126 = vmatpush3.bf16.msra.mxu0 %v2301_v57 }
 0x8ab   : > { %2127 = vmatprep.subr.bf16.mxu0 %v2554_v19 }
 0x8ae   : > { %2128 = vmatpush3.bf16.msra.mxu0 %v2302_v62 }
 0x8af   : > { %2129 = vmatprep.subr.bf16.mxu0 %v2554_v19 }
 0x8b2   : > { %2130 = vmatpush3.bf16.msra.mxu0 %v2303_v63 }
 0x8b3   : > { %2131 = vmatprep.subr.bf16.mxu0 %v2554_v19 }
 0x965   : > { %v1397_v43 = vpop.f32.mrf.mxu0 }
 0x966   : > { %v1403_v44 = vpack.c.bf16 %v1397_v43, %v1397_v43 }
 0x967   : > { %v2113_v45 = vpop.f32.mrf.mxu0 }
 0x968   : > { %2120 = vmatmul.mubr.msk.bf16.vlgmr.msra.gmra.mxu1 %vm778_vm1, %v1403_v44 }
 0x969   : > { %v1400_v46 = vpop.f32.mrf.mxu0  ;;  %2159 = vmatprep.mubr.msk.bf16.mxu1 %vm2555_vm0, %v2554_v19  ;;  %2144 = vmatpush3.bf16.msra.mxu1 %v2308_v3 }
 0x96a   : > { %2145 = vmatprep.subr.bf16.mxu1 %v2554_v19 }
 0x96b   : > { %v2114_v47 = vpop.f32.mrf.mxu0 }
 0x96d   : > { %2146 = vmatpush3.bf16.msra.mxu1 %v2309_v4 }
 0x96e   : > { %2147 = vmatprep.subr.bf16.mxu1 %v2554_v19 }
 0x971   : > { %2148 = vmatpush3.bf16.msra.mxu1 %v2310_v14 }
 0x972   : > { %2149 = vmatprep.subr.bf16.mxu1 %v2554_v19 }
 0x975   : > { %2150 = vmatpush3.bf16.msra.mxu1 %v2311_v15 }
 0x976   : > { %2151 = vmatprep.subr.bf16.mxu1 %v2554_v19 }
 0x979   : > { %2152 = vmatpush3.bf16.msra.mxu1 %v2312_v16 }
 0x97a   : > { %2153 = vmatprep.subr.bf16.mxu1 %v2554_v19 }
 0x97d   : > { %2154 = vmatpush3.bf16.msra.mxu1 %v2313_v18 }
 0x97e   : > { %2155 = vmatprep.subr.bf16.mxu1 %v2554_v19 }
 0x981   : > { %2156 = vmatpush3.bf16.msra.mxu1 %v2314_v20 }
 0x982   : > { %2157 = vmatprep.subr.bf16.mxu1 %v2554_v19 }
 0x985   : > { %2158 = vmatpush3.bf16.msra.mxu1 %v2315_v21 }
 0xa28   : > { %v1457_v48 = vpop.f32.mrf.mxu1 }
 0xa29   : > { %v1463_v50 = vadd.f32 %v1457_v48, %v1291_v30 }
 0xa2a   : > { %v2121_v51 = vpop.f32.mrf.mxu1 }
 0xa2b   : > { %v1471_v52 = vadd.f32 %v1941_v49, %v1463_v50  ;;  %v1962_v49 = vld [vmem:[%s3014_s11] ss:$0 sm:$0xff] }
 0xa2c   : > { %v1460_v53 = vpop.f32.mrf.mxu1  ;;  %v1963_v51 = vld [vmem:[%s3015_s12] ss:$0 sm:$0xff] }
 0xa2d   : > { %v1472_v54 = vadd.f32 %v1471_v52, %v2799_v17  ;;  %v2304_v17 = vld [vmem:[#allocation8 + $0x18] sm:$0xff]  }
 0xa2e   : > { %v2122_v55 = vpop.f32.mrf.mxu1  ;;  %2132 = vmatpush3.bf16.msra.mxu0 %v2304_v17 }
 0xa2f   : > { %1475 = vadd.xlane.f32.xlu1 %v1472_v54  ;;  %2133 = vmatprep.subr.bf16.mxu0 %v2554_v19 }
 0xa32   : > { %2134 = vmatpush3.bf16.msra.mxu0 %v2305_v0 }
 0xa33   : > { %2135 = vmatprep.subr.bf16.mxu0 %v2554_v19 }
 0xa36   : > { %2136 = vmatpush3.bf16.msra.mxu0 %v2306_v1 }
 0xa37   : > { %2137 = vmatprep.subr.bf16.mxu0 %v2554_v19  ;;  %v1953_v19 = vld [vmem:[%s3013_s10] ss:$0 sm:$0xff] }
 0xa3a   : > { %2138 = vmatpush3.bf16.msra.mxu0 %v2307_v2 }
 0xab8   : > { %v1476_v58 = vpop.xlane.xlu1 %1475 }
 0xab9   : > { %v1478_v59 = vmul.f32 0.0078125, %v1476_v58 }
 0xabb   : > { %v1479_v60 = vsub.f32 %v1472_v54, %v1478_v59 }
 0xabd   : > { %v1480_v61 = vmul.f32 %v1479_v60, %v1479_v60 }
 0xabf   : > { %1481 = vadd.xlane.f32.xlu0 %v1480_v61 }
 0xb48   : > { %v1482_v5 = vpop.xlane.xlu0 %1481 }
 0xb49   : > { %v1483_v6 = vmul.f32 0.0078125, %v1482_v5 }
 0xb4b   : > { %v1484_v8 = vadd.f32 1e-05, %v1483_v6 }
 0xb4d   : > { %2332 = vrsqrt.f32 %v1484_v8 }
 0xb5a   : > { %v2333_v9 = vpop.eup %2332 }
 0xb5b   : > { %v1486_v35 = vmul.f32 %v2333_v9, %v1479_v60 }
 0xb5d   : > { %v1493_v11 = vmul.f32 %v1942_v32, %v1486_v35 }
 0xb5f   : > { %v1500_v12 = vadd.f32 %v1943_v10, %v1493_v11 }
 0xb61   : > { %v1501_v13 = vpack.c.bf16 %v1500_v12, %v1500_v12 }
 0xb63   : > { %2140 = vmatmul.mubr.bf16.vlgmr.msra.gmra.mxu0 %v1501_v13 }
 0xc23   : > { %v1607_v23 = vpop.f32.mrf.mxu0 }
 0xc24   : > { %v1608_v24 = vadd.f32 %v1944_v22, %v1607_v23 }
 0xc25   : > { %v2141_v25 = vpop.f32.mrf.mxu0 }
 0xc26   : > { %v1614_v26 = vmul.f32 0.70710677, %v1608_v24  ;;  %v1613_v30 = vmul.f32 0.5, %v1608_v24 }
 0xc27   : > { %v1610_v27 = vpop.f32.mrf.mxu0 }
 0xc28   : > { %2334 = verf.f32 %v1614_v26 }
 0xc29   : > { %v2142_v28 = vpop.f32.mrf.mxu0 }
 0xc35   : > { %v2335_v29 = vpop.eup %2334 }
 0xc36   : > { %v1616_v31 = vadd.f32 1.0, %v2335_v29 }
 0xc38   : > { %v1617_v33 = vmul.f32 %v1616_v31, %v1613_v30 }
 0xc3a   : > { %v1618_v34 = vpack.c.bf16 %v1617_v33, %v1617_v33 }
 0xc3c   : > { %2160 = vmatmul.mubr.bf16.vlgmr.msra.gmra.mxu1 %v1618_v34 }
 0xcfc   : > { %v1724_v36 = vpop.f32.mrf.mxu1 }
 0xcfd   : > { %v1725_v37 = vadd.f32 %v1953_v19, %v1724_v36 }
 0xcfe   : > { %v2161_v38 = vpop.f32.mrf.mxu1 }
 0xcff   : > { %v1730_v39 = vadd.f32 %v1725_v37, %v1500_v12 }
 0xd00   : > { %v1727_v7 = vpop.f32.mrf.mxu1 }
 0xd01   : > { %1733 = vadd.xlane.f32.xlu0 %v1730_v39 }
 0xd02   : > { %v2162_v40 = vpop.f32.mrf.mxu1 }
 0xd8a   : > { %v1734_v41 = vpop.xlane.xlu0 %1733 }
 0xd8b   : > { %v1735_v42 = vmul.f32 0.0078125, %v1734_v41 }
 0xd8d   : > { %v1736_v43 = vsub.f32 %v1730_v39, %v1735_v42 }
 0xd8f   : > { %v1737_v44 = vmul.f32 %v1736_v43, %v1736_v43 }
 0xd91   : > { %1738 = vadd.xlane.f32.xlu0 %v1737_v44 }
 0xe1a   : > { %v1739_v45 = vpop.xlane.xlu0 %1738 }
 0xe1b   : > { %v1740_v46 = vmul.f32 0.0078125, %v1739_v45 }
 0xe1d   : > { %v1741_v47 = vadd.f32 1e-05, %v1740_v46 }
 0xe1f   : > { %2336 = vrsqrt.f32 %v1741_v47 }
 0xe2c   : > { %v2337_v48 = vpop.eup %2336 }
 0xe2d   : > { %v1743_v50 = vmul.f32 %v2337_v48, %v1736_v43 }
 0xe2f   : > { %v1750_v52 = vmul.f32 %v1962_v49, %v1743_v50 }
 0xe31   : > { %v1757_v53 = vadd.f32 %v1963_v51, %v1750_v52 }
 0xe33   : > { %1758 = vst [vmem:[%s513_s24] sm:$0xff] %v1757_v53 }
 0xe34   : > { %2483 = shalt.err (!%p2480_p11)
}
 0xe35   : > { %s2484_s1 = scalar_lea.hbm %s1771_s30, 128  ;;  %s2488_s9 = scalar_lea.hbm %s3016_s13, 256 }
 0xe36   : > { %p2485_p13 = scmp.ne.s32.totalorder %s1771_s30, %s2484_s1  ;;  %p2489_p4 = scmp.lt.s32.totalorder %s1771_s30, %s3016_s13 }
 0xe37   : > { %p2490_p6 = scmp.lt.s32.totalorder %s2488_s9, %s2484_s1 }
 0xe38   : > { %p2486_p1 = pnand %p2485_p13, %p3050_p7 }
 0xe39   : > { %p2491_p2 = por %p2490_p6, %p2489_p4 }
 0xe3a   : > { %p2487_p3 = pneg %p2486_p1 }
 0xe3c   : > { %p2492_p8 = pnand %p2491_p2, %p2487_p3 }
 0xe3e   : > { %2495 = shalt.err (!%p2492_p8)
}
 0xe3f   : > { %2181 = dma.vmem_to_hbm [thread:$0]  (%p3050_p7), %s1774_s29, 128, %s1771_s30, %s1760_s21  }
 0xe40 PF: > { %s3051_s19 = sld [smem:[#allocation17_spill]]  ;;  %s1785_s24 = sand.u32 1, %s2530_s25  }
 0xe41   : > { %p3052_p10 = scmp.ne.s32.totalorder %s3042_s22, 0  ;;  %s1786_s23 = scalar_lea.sflag [#allocation4], %s1785_s24 }
 0xe46   : > { %p3053_p0 = scmp.ge.s32.totalorder %s3051_s19, 2 }
 0xe48   : > { %p2201_p12 = pnand %p3053_p0, %p3052_p10 }
 0xe4a   : > { %p2202_p5 = pneg %p2201_p12 }
 0xe4c   : > { %2525 = dma.done.wait (%p2202_p5), %s1786_s23, 128  }
 0xe4d   : > { %2527 = vsyncadd (%p2202_p5), %s1786_s23, 4294967168  ;;  %s3054_s28 = sld [smem:[#allocation18_spill]]  ;;  %s3057_s25 = smov %s2534_s26 }
 0xe4e   : > { %s3055_s20 = sld [smem:[#allocation16_spill]] }
 0xe4f   : > { %s3056_s27 = sld [smem:[#allocation19_spill]] }
 0xe53   : > { %p28_p9 = scmp.ge.s32.totalorder %s3054_s28, 4  }
 0xe54   : > { %s3058_s26 = smov %s3055_s20 }
 0xe55   :  { %30 = sbr.rel (!%p28_p9) target bundleno = 12 (0xc), region = 133 }
 0xe5a   :  { %1791 = vsyncpa [#allocation3], 1 }
 0xe5b   :  { %1793 = vsyncpa [#allocation3 + $0x1], 1 }
 0xe5c   :  { %1794 = vsyncpa [#allocation6], 1 }
 0xe5d   :  { %1795 = vsyncpa [#allocation9], 1 }
 0xe5e   :  { %1796 = vsyncpa [#allocation4], 1 }
 0xe5f   :  { %1798 = vsyncpa [#allocation4 + $0x1], 1 }

</bundles_post_ra>
